<compile_context>
chip_gen: v7x
topology: tpu7x:2x2x1
jax: 0.10.0
libtpu: 0.0.40
codegen_flags: <defaults>
</compile_context>

<pallas_src>
import functools

import jax
import jax.numpy as jnp
from jax.experimental import pallas as pl
from jax.experimental.pallas import tpu as pltpu


def _round_up(x, m):
    return ((x + m - 1) // m) * m


# ----------------------------- Pallas kernel ---------------------------------

def _conv_seq_kernel(x_ref, w_ref, b_ref, mask_ref, o_ref, buf_ref, tap_ref, *,
                     num_layers, wp, hpwp_pad, margin, lb, hidden, cmax, b_tile):
    """Full Conv(3x3,pad=1)+ReLU stack for b_tile batch elements.

    x_ref    : (1, cmax, b_tile*lb)          zero-padded flat inputs (lane-folded batch)
    w_ref    : (L, hidden, 9*cmax)           tap-stacked weight matrices
    b_ref    : (L, hidden, 1)                biases (f32)
    mask_ref : (1, b_tile*hpwp_pad)          1.0 on interior pixels, 0.0 on halo/pad
    o_ref    : (b_tile, hidden, hpwp_pad)    flat (still halo-padded) last-layer output
    buf_ref  : (cmax, b_tile*lb)             resident VMEM activation buffer
    tap_ref  : (9*cmax, b_tile*hpwp_pad)     tap-stacked matmul operand (K = 9*cmax)
    """
    # --- minimal scratch init --------------------------------------------------
    # Only lanes that are read but never written need to be zero: the per-image
    # margin strips (they provide the conv's zero padding for every layer) and,
    # if cmax > hidden, the channel rows that no layer writes.
    # (Not gated on program_id == 0: under megacore grid partitioning the second
    #  core never executes step 0, so per-step zeroing of these narrow strips is
    #  the safe + cheap choice.)
    zero_strip = jnp.zeros((cmax, margin), buf_ref.dtype)
    for b in range(b_tile):
        buf_ref[pl.ds(0, cmax), pl.ds(b * lb, margin)] = zero_strip
        buf_ref[pl.ds(0, cmax), pl.ds(b * lb + margin + hpwp_pad, margin)] = zero_strip
    if cmax > hidden:
        buf_ref[pl.ds(hidden, cmax - hidden), pl.ds(0, b_tile * lb)] = jnp.zeros(
            (cmax - hidden, b_tile * lb), buf_ref.dtype)

    mask = mask_ref[...]                                   # (1, b_tile*hpwp_pad) f32

    for l in range(num_layers):
        # --- stage the 9 shifted tap views, stacked along the K (sublane) axis
        for b in range(b_tile):
            base = b * lb + margin
            for kh in range(3):
                for kw in range(3):
                    t = kh * 3 + kw
                    start = base + (kh - 1) * wp + (kw - 1)   # static lane offset
                    if l == 0:
                        tap = x_ref[0, :, pl.ds(start, hpwp_pad)]
                    else:
                        tap = buf_ref[pl.ds(0, cmax), pl.ds(start, hpwp_pad)]
                    tap_ref[pl.ds(t * cmax, cmax),
                            pl.ds(b * hpwp_pad, hpwp_pad)] = tap

        # --- ONE MXU matmul per layer: (hidden, 9*cmax) @ (9*cmax, b_tile*hpwp_pad)
        acc = jnp.dot(w_ref[l], tap_ref[...],
                      preferred_element_type=jnp.float32)
        acc = jnp.maximum(acc + b_ref[l], 0.0)             # bias + ReLU (f32)

        if l == num_layers - 1:
            # Halo / pad lanes are cropped by the wrapper -> no mask multiply.
            for b in range(b_tile):
                o_ref[b] = acc[:, b * hpwp_pad:(b + 1) * hpwp_pad].astype(o_ref.dtype)
        else:
            # Zero halo/pad lanes so they act as the next layer's zero padding,
            # then write back in place (safe: the taps were already copied out).
            y = (acc * mask).astype(buf_ref.dtype)
            for b in range(b_tile):
                buf_ref[pl.ds(0, hidden), pl.ds(b * lb + margin, hpwp_pad)] = (
                    y[:, b * hpwp_pad:(b + 1) * hpwp_pad])


# ------------------------------- wrapper --------------------------------------

def prepare_conv_sequence_params(params, compute_dtype=jnp.float32):
    """Hoisted out of the forward path (done once per parameter set):
    pack OIHW weights into tap-stacked (L, hidden, 9*cmax) matrices (the K axis
    ordering matches the kernel's tap staging: column = tap*cmax + channel),
    zero-padding the input-channel dim up to cmax; stack biases as (L, hidden, 1)."""
    num_layers = len(params)
    hidden = params[0][0].shape[0]
    cmax = max(hidden, max(w.shape[1] for w, _ in params))

    w_all = jnp.zeros((num_layers, hidden, 9, cmax), compute_dtype)
    for l, (w, _) in enumerate(params):
        cout, cin, kh, kw = w.shape
        assert (kh, kw) == (3, 3) and cout == hidden
        # (Cout, Cin, kh, kw) -> (Cout, kh*3+kw, Cin)
        w_taps = jnp.transpose(w, (0, 2, 3, 1)).reshape(cout, 9, cin)
        w_all = w_all.at[l, :, :, :cin].set(w_taps.astype(compute_dtype))
    w_all = w_all.reshape(num_layers, hidden, 9 * cmax)

    b_all = jnp.stack([b for _, b in params]).astype(jnp.float32)
    b_all = b_all.reshape(num_layers, hidden, 1)
    return w_all, b_all


@functools.partial(jax.jit, static_argnames=("b_tile",))
def conv_sequence_forward(x_nchw, w_all, b_all, b_tile=None):
    """ConvSequence.forward.  x: (N, Cin, H, W) NCHW -> (N, hidden, H, W)."""
    n, cin, h, w = x_nchw.shape
    num_layers, hidden, nine_cmax = w_all.shape
    cmax = nine_cmax // 9
    hp, wp = h + 2, w + 2
    hpwp = hp * wp
    hpwp_pad = _round_up(hpwp, 128)            # lane-dense acc / stores (review)
    margin = _round_up(wp + 1, 128)            # lane-aligned halo margin
    lb = hpwp_pad + 2 * margin                 # per-image flat lane extent (mult of 128)
    compute_dtype = w_all.dtype

    # Batch tiling: b_tile images folded onto the lane axis per grid step.
    # Default keeps >= 2 grid steps (v7x: 2 TensorCores); on single-TC chips
    # (v5e/v6e) pass b_tile=n for a single fat step.
    if b_tile is None:
        b_tile = max(1, -(-n // 2))
    n_pad = _round_up(n, b_tile)
    ntiles = n_pad // b_tile

    # Zero-pad: batch to n_pad, channels to cmax, spatial by 1; flatten spatial;
    # add zero margins + lane padding (the pad tail is masked in the kernel).
    xp = jnp.pad(x_nchw, ((0, n_pad - n), (0, cmax - cin), (1, 1), (1, 1)))
    x_flat = jnp.pad(xp.reshape(n_pad, cmax, hpwp).astype(compute_dtype),
                     ((0, 0), (0, 0), (margin, margin + hpwp_pad - hpwp)))
    # Fold b_tile images onto the lane axis: (ntiles, cmax, b_tile*lb)
    x_fold = (x_flat.reshape(ntiles, b_tile, cmax, lb)
              .transpose(0, 2, 1, 3)
              .reshape(ntiles, cmax, b_tile * lb))

    # Interior (non-halo, non-pad) mask over the flattened padded spatial axis,
    # tiled per image on the lane axis.
    pos = jnp.arange(hpwp_pad, dtype=jnp.int32)
    row, col = pos // wp, pos % wp
    interior = (pos < hpwp) & (row >= 1) & (row <= h) & (col >= 1) & (col <= w)
    mask = jnp.tile(interior.astype(jnp.float32), b_tile).reshape(1, b_tile * hpwp_pad)

    kernel = functools.partial(
        _conv_seq_kernel, num_layers=num_layers, wp=wp, hpwp_pad=hpwp_pad,
        margin=margin, lb=lb, hidden=hidden, cmax=cmax, b_tile=b_tile)

    # Explicit VMEM budget (matters when scaling H*W / hidden, esp. on v7x 64 MiB).
    esz = jnp.dtype(compute_dtype).itemsize
    vmem_est = (2 * cmax * b_tile * lb * esz              # x block (double-buffered)
                + 2 * b_tile * hidden * hpwp_pad * 4      # out block (double-buffered)
                + cmax * b_tile * lb * esz                # resident activation buffer
                + 9 * cmax * b_tile * hpwp_pad * esz      # tap-stacked operand
                + 2 * (w_all.size * esz + b_all.size * 4 + mask.size * 4))
    vmem_limit = int(min(max(2 * vmem_est, 32 * 1024 * 1024), 100 * 1024 * 1024))

    out_flat = pl.pallas_call(
        kernel,
        out_shape=jax.ShapeDtypeStruct((n_pad, hidden, hpwp_pad), jnp.float32),
        grid_spec=pltpu.PrefetchScalarGridSpec(
            num_scalar_prefetch=0,
            grid=(ntiles,),
            in_specs=[
                pl.BlockSpec((1, cmax, b_tile * lb), lambda i: (i, 0, 0)),      # images
                pl.BlockSpec((num_layers, hidden, 9 * cmax),
                             lambda i: (0, 0, 0)),                              # weights
                pl.BlockSpec((num_layers, hidden, 1), lambda i: (0, 0, 0)),     # bias
                pl.BlockSpec((1, b_tile * hpwp_pad), lambda i: (0, 0)),         # mask
            ],
            out_specs=pl.BlockSpec((b_tile, hidden, hpwp_pad), lambda i: (i, 0, 0)),
            scratch_shapes=[
                pltpu.VMEM((cmax, b_tile * lb), compute_dtype),                 # activations
                pltpu.VMEM((9 * cmax, b_tile * hpwp_pad), compute_dtype),       # tap stack
            ],
        ),
        compiler_params=pltpu.CompilerParams(
            dimension_semantics=("parallel",),
            vmem_limit_bytes=vmem_limit),
    )(x_fold, w_all, b_all, mask)

    # Drop lane pad + halo: (n, hidden, hpwp_pad) -> (n, hidden, H, W), NCHW.
    out = out_flat[:n, :, :hpwp].reshape(n, hidden, hp, wp)[:, :, 1:1 + h, 1:1 + w]
    return out


# -------------------------- deterministic params ------------------------------

def make_conv_sequence_params(layers, c_in, hidden, k=3, key=None):
    """first_block: Conv(c_in -> hidden); remaining (layers-1) blocks are
    deep-copies of Conv(hidden -> hidden) -- deep copies share initial values,
    mirroring copy.deepcopy(block) in the PyTorch module."""
    key = jax.random.PRNGKey(0) if key is None else key
    k_first_w, k_first_b, k_blk_w, k_blk_b = jax.random.split(key, 4)

    first_w = jax.random.normal(k_first_w, (hidden, c_in, k, k), jnp.float32) * 0.1
    first_b = jax.random.normal(k_first_b, (hidden,), jnp.float32) * 0.1

    blk_w = jax.random.normal(k_blk_w, (hidden, hidden, k, k), jnp.float32) * 0.1
    blk_b = jax.random.normal(k_blk_b, (hidden,), jnp.float32) * 0.1

    params = [(first_w, first_b)]
    for _ in range(layers - 1):
        params.append((blk_w, blk_b))              # deepcopy => identical init
    return params


# ----------------------------- reference check --------------------------------

def _reference_forward(x_nchw, params):
    x = x_nchw
    for w, b in params:
        x = jax.lax.conv_general_dilated(
            x, w, window_strides=(1, 1), padding="SAME",
            dimension_numbers=("NCHW", "OIHW", "NCHW"))
        x = jnp.maximum(x + b[None, :, None, None], 0.0)
    return x


# ----------------------------------- main --------------------------------------

if __name__ == "__main__":
    N, C_IN, H, W = 4, 4, 16, 16
    HIDDEN = 8
    LAYERS = 3   # first_block (4 -> 8) + 2 deep copies of block (8 -> 8)

    key = jax.random.PRNGKey(0)
    k_x, k_p = jax.random.split(key)
    x = jax.random.normal(k_x, (N, C_IN, H, W), jnp.float32)
    params = make_conv_sequence_params(LAYERS, C_IN, HIDDEN, key=k_p)

    # Weight packing hoisted out of the forward path (done once).
    # For v6e/v7x throughput, pass compute_dtype=jnp.bfloat16 here (f32
    # accumulation is kept; loosen the allclose tolerance for that path).
    w_all, b_all = prepare_conv_sequence_params(params, compute_dtype=jnp.float32)

    # Default b_tile = ceil(N/2): 2 images per grid step, 2 grid steps.
    out = conv_sequence_forward(x, w_all, b_all)
    out = jax.block_until_ready(out)

    ref = _reference_forward(x, params)
    assert out.shape == (N, HIDDEN, H, W), out.shape
    assert jnp.allclose(out, ref, rtol=1e-4, atol=1e-4), "mismatch vs reference conv"

    print("KERNEL_OK")
</pallas_src>

<mosaic_0001>
module attributes {stable_mosaic.version = 11 : i64} {
  func.func @_conv_seq_kernel(%arg0: i32, %arg1: memref<1x8x1280xf32, #tpu.memory_space<vmem>>, %arg2: memref<3x8x72xf32, #tpu.memory_space<vmem>>, %arg3: memref<3x8x1xf32, #tpu.memory_space<vmem>>, %arg4: memref<1x768xf32, #tpu.memory_space<vmem>>, %arg5: memref<2x8x384xf32, #tpu.memory_space<vmem>>, %arg6: memref<8x1280xf32, #tpu.memory_space<vmem>>, %arg7: memref<72x768xf32, #tpu.memory_space<vmem>>) attributes {dimension_semantics = [#tpu.dimension_semantics<parallel>], iteration_bounds = array<i64: 2>, scalar_prefetch = 0 : i64, scratch_operands = 2 : i64, tpu.core_type = #tpu.core_type<tc>, window_params = [{transform_indices = @transform_0, window_bounds = array<i64: 1, 8, 1280>}, {pipeline_mode = #tpu.pipeline_mode<synchronous>, transform_indices = @transform_1, window_bounds = array<i64: 3, 8, 72>}, {pipeline_mode = #tpu.pipeline_mode<synchronous>, transform_indices = @transform_2, window_bounds = array<i64: 3, 8, 1>}, {pipeline_mode = #tpu.pipeline_mode<synchronous>, transform_indices = @transform_3, window_bounds = array<i64: 1, 768>}, {transform_indices = @transform_4, window_bounds = array<i64: 2, 8, 384>}]} {
    %cst = arith.constant 0.000000e+00 : f32
    %0 = vector.broadcast %cst : f32 to vector<8x128xf32>
    %c0 = arith.constant 0 : index
    %c0_0 = arith.constant 0 : index
    %1 = vector.load %arg6[%c0, %c0_0] : memref<8x1280xf32, #tpu.memory_space<vmem>>, vector<8x128xf32>
    tpu.vector_store %arg6[%c0, %c0_0], %0 {strides = array<i32>} : memref<8x1280xf32, #tpu.memory_space<vmem>>, vector<8x128xf32>,
    %c0_1 = arith.constant 0 : index
    %c512 = arith.constant 512 : index
    %2 = vector.load %arg6[%c0_1, %c512] : memref<8x1280xf32, #tpu.memory_space<vmem>>, vector<8x128xf32>
    tpu.vector_store %arg6[%c0_1, %c512], %0 {strides = array<i32>} : memref<8x1280xf32, #tpu.memory_space<vmem>>, vector<8x128xf32>,
    %c0_2 = arith.constant 0 : index
    %c640 = arith.constant 640 : index
    %3 = vector.load %arg6[%c0_2, %c640] : memref<8x1280xf32, #tpu.memory_space<vmem>>, vector<8x128xf32>
    tpu.vector_store %arg6[%c0_2, %c640], %0 {strides = array<i32>} : memref<8x1280xf32, #tpu.memory_space<vmem>>, vector<8x128xf32>,
    %c0_3 = arith.constant 0 : index
    %c1152 = arith.constant 1152 : index
    %4 = vector.load %arg6[%c0_3, %c1152] : memref<8x1280xf32, #tpu.memory_space<vmem>>, vector<8x128xf32>
    tpu.vector_store %arg6[%c0_3, %c1152], %0 {strides = array<i32>} : memref<8x1280xf32, #tpu.memory_space<vmem>>, vector<8x128xf32>,
    %c0_4 = arith.constant 0 : index
    %c0_5 = arith.constant 0 : index
    %5 = vector.load %arg4[%c0_4, %c0_5] : memref<1x768xf32, #tpu.memory_space<vmem>>, vector<1x768xf32>
    %c0_6 = arith.constant 0 : index
    %c0_7 = arith.constant 0 : index
    %c109 = arith.constant 109 : index
    %6 = vector.load %arg1[%c0_6, %c0_7, %c109] : memref<1x8x1280xf32, #tpu.memory_space<vmem>>, vector<1x8x384xf32>
    %7 = vector.shape_cast %6 : vector<1x8x384xf32> to vector<8x384xf32>
    %c0_8 = arith.constant 0 : index
    %c0_9 = arith.constant 0 : index
    %8 = vector.load %arg7[%c0_8, %c0_9] : memref<72x768xf32, #tpu.memory_space<vmem>>, vector<8x384xf32>
    tpu.vector_store %arg7[%c0_8, %c0_9], %7 {strides = array<i32>} : memref<72x768xf32, #tpu.memory_space<vmem>>, vector<8x384xf32>,
    %c0_10 = arith.constant 0 : index
    %c0_11 = arith.constant 0 : index
    %c110 = arith.constant 110 : index
    %9 = vector.load %arg1[%c0_10, %c0_11, %c110] : memref<1x8x1280xf32, #tpu.memory_space<vmem>>, vector<1x8x384xf32>
    %10 = vector.shape_cast %9 : vector<1x8x384xf32> to vector<8x384xf32>
    %c8 = arith.constant 8 : index
    %c0_12 = arith.constant 0 : index
    %11 = vector.load %arg7[%c8, %c0_12] : memref<72x768xf32, #tpu.memory_space<vmem>>, vector<8x384xf32>
    tpu.vector_store %arg7[%c8, %c0_12], %10 {strides = array<i32>} : memref<72x768xf32, #tpu.memory_space<vmem>>, vector<8x384xf32>,
    %c0_13 = arith.constant 0 : index
    %c0_14 = arith.constant 0 : index
    %c111 = arith.constant 111 : index
    %12 = vector.load %arg1[%c0_13, %c0_14, %c111] : memref<1x8x1280xf32, #tpu.memory_space<vmem>>, vector<1x8x384xf32>
    %13 = vector.shape_cast %12 : vector<1x8x384xf32> to vector<8x384xf32>
    %c16 = arith.constant 16 : index
    %c0_15 = arith.constant 0 : index
    %14 = vector.load %arg7[%c16, %c0_15] : memref<72x768xf32, #tpu.memory_space<vmem>>, vector<8x384xf32>
    tpu.vector_store %arg7[%c16, %c0_15], %13 {strides = array<i32>} : memref<72x768xf32, #tpu.memory_space<vmem>>, vector<8x384xf32>,
    %c0_16 = arith.constant 0 : index
    %c0_17 = arith.constant 0 : index
    %c127 = arith.constant 127 : index
    %15 = vector.load %arg1[%c0_16, %c0_17, %c127] : memref<1x8x1280xf32, #tpu.memory_space<vmem>>, vector<1x8x384xf32>
    %16 = vector.shape_cast %15 : vector<1x8x384xf32> to vector<8x384xf32>
    %c24 = arith.constant 24 : index
    %c0_18 = arith.constant 0 : index
    %17 = vector.load %arg7[%c24, %c0_18] : memref<72x768xf32, #tpu.memory_space<vmem>>, vector<8x384xf32>
    tpu.vector_store %arg7[%c24, %c0_18], %16 {strides = array<i32>} : memref<72x768xf32, #tpu.memory_space<vmem>>, vector<8x384xf32>,
    %c0_19 = arith.constant 0 : index
    %c0_20 = arith.constant 0 : index
    %c128 = arith.constant 128 : index
    %18 = vector.load %arg1[%c0_19, %c0_20, %c128] : memref<1x8x1280xf32, #tpu.memory_space<vmem>>, vector<1x8x384xf32>
    %19 = vector.shape_cast %18 : vector<1x8x384xf32> to vector<8x384xf32>
    %c32 = arith.constant 32 : index
    %c0_21 = arith.constant 0 : index
    %20 = vector.load %arg7[%c32, %c0_21] : memref<72x768xf32, #tpu.memory_space<vmem>>, vector<8x384xf32>
    tpu.vector_store %arg7[%c32, %c0_21], %19 {strides = array<i32>} : memref<72x768xf32, #tpu.memory_space<vmem>>, vector<8x384xf32>,
    %c0_22 = arith.constant 0 : index
    %c0_23 = arith.constant 0 : index
    %c129 = arith.constant 129 : index
    %21 = vector.load %arg1[%c0_22, %c0_23, %c129] : memref<1x8x1280xf32, #tpu.memory_space<vmem>>, vector<1x8x384xf32>
    %22 = vector.shape_cast %21 : vector<1x8x384xf32> to vector<8x384xf32>
    %c40 = arith.constant 40 : index
    %c0_24 = arith.constant 0 : index
    %23 = vector.load %arg7[%c40, %c0_24] : memref<72x768xf32, #tpu.memory_space<vmem>>, vector<8x384xf32>
    tpu.vector_store %arg7[%c40, %c0_24], %22 {strides = array<i32>} : memref<72x768xf32, #tpu.memory_space<vmem>>, vector<8x384xf32>,
    %c0_25 = arith.constant 0 : index
    %c0_26 = arith.constant 0 : index
    %c145 = arith.constant 145 : index
    %24 = vector.load %arg1[%c0_25, %c0_26, %c145] : memref<1x8x1280xf32, #tpu.memory_space<vmem>>, vector<1x8x384xf32>
    %25 = vector.shape_cast %24 : vector<1x8x384xf32> to vector<8x384xf32>
    %c48 = arith.constant 48 : index
    %c0_27 = arith.constant 0 : index
    %26 = vector.load %arg7[%c48, %c0_27] : memref<72x768xf32, #tpu.memory_space<vmem>>, vector<8x384xf32>
    tpu.vector_store %arg7[%c48, %c0_27], %25 {strides = array<i32>} : memref<72x768xf32, #tpu.memory_space<vmem>>, vector<8x384xf32>,
    %c0_28 = arith.constant 0 : index
    %c0_29 = arith.constant 0 : index
    %c146 = arith.constant 146 : index
    %27 = vector.load %arg1[%c0_28, %c0_29, %c146] : memref<1x8x1280xf32, #tpu.memory_space<vmem>>, vector<1x8x384xf32>
    %28 = vector.shape_cast %27 : vector<1x8x384xf32> to vector<8x384xf32>
    %c56 = arith.constant 56 : index
    %c0_30 = arith.constant 0 : index
    %29 = vector.load %arg7[%c56, %c0_30] : memref<72x768xf32, #tpu.memory_space<vmem>>, vector<8x384xf32>
    tpu.vector_store %arg7[%c56, %c0_30], %28 {strides = array<i32>} : memref<72x768xf32, #tpu.memory_space<vmem>>, vector<8x384xf32>,
    %c0_31 = arith.constant 0 : index
    %c0_32 = arith.constant 0 : index
    %c147 = arith.constant 147 : index
    %30 = vector.load %arg1[%c0_31, %c0_32, %c147] : memref<1x8x1280xf32, #tpu.memory_space<vmem>>, vector<1x8x384xf32>
    %31 = vector.shape_cast %30 : vector<1x8x384xf32> to vector<8x384xf32>
    %c64 = arith.constant 64 : index
    %c0_33 = arith.constant 0 : index
    %32 = vector.load %arg7[%c64, %c0_33] : memref<72x768xf32, #tpu.memory_space<vmem>>, vector<8x384xf32>
    tpu.vector_store %arg7[%c64, %c0_33], %31 {strides = array<i32>} : memref<72x768xf32, #tpu.memory_space<vmem>>, vector<8x384xf32>,
    %c0_34 = arith.constant 0 : index
    %c0_35 = arith.constant 0 : index
    %c749 = arith.constant 749 : index
    %33 = vector.load %arg1[%c0_34, %c0_35, %c749] : memref<1x8x1280xf32, #tpu.memory_space<vmem>>, vector<1x8x384xf32>
    %34 = vector.shape_cast %33 : vector<1x8x384xf32> to vector<8x384xf32>
    %c0_36 = arith.constant 0 : index
    %c384 = arith.constant 384 : index
    %35 = vector.load %arg7[%c0_36, %c384] : memref<72x768xf32, #tpu.memory_space<vmem>>, vector<8x384xf32>
    tpu.vector_store %arg7[%c0_36, %c384], %34 {strides = array<i32>} : memref<72x768xf32, #tpu.memory_space<vmem>>, vector<8x384xf32>,
    %c0_37 = arith.constant 0 : index
    %c0_38 = arith.constant 0 : index
    %c750 = arith.constant 750 : index
    %36 = vector.load %arg1[%c0_37, %c0_38, %c750] : memref<1x8x1280xf32, #tpu.memory_space<vmem>>, vector<1x8x384xf32>
    %37 = vector.shape_cast %36 : vector<1x8x384xf32> to vector<8x384xf32>
    %c8_39 = arith.constant 8 : index
    %c384_40 = arith.constant 384 : index
    %38 = vector.load %arg7[%c8_39, %c384_40] : memref<72x768xf32, #tpu.memory_space<vmem>>, vector<8x384xf32>
    tpu.vector_store %arg7[%c8_39, %c384_40], %37 {strides = array<i32>} : memref<72x768xf32, #tpu.memory_space<vmem>>, vector<8x384xf32>,
    %c0_41 = arith.constant 0 : index
    %c0_42 = arith.constant 0 : index
    %c751 = arith.constant 751 : index
    %39 = vector.load %arg1[%c0_41, %c0_42, %c751] : memref<1x8x1280xf32, #tpu.memory_space<vmem>>, vector<1x8x384xf32>
    %40 = vector.shape_cast %39 : vector<1x8x384xf32> to vector<8x384xf32>
    %c16_43 = arith.constant 16 : index
    %c384_44 = arith.constant 384 : index
    %41 = vector.load %arg7[%c16_43, %c384_44] : memref<72x768xf32, #tpu.memory_space<vmem>>, vector<8x384xf32>
    tpu.vector_store %arg7[%c16_43, %c384_44], %40 {strides = array<i32>} : memref<72x768xf32, #tpu.memory_space<vmem>>, vector<8x384xf32>,
    %c0_45 = arith.constant 0 : index
    %c0_46 = arith.constant 0 : index
    %c767 = arith.constant 767 : index
    %42 = vector.load %arg1[%c0_45, %c0_46, %c767] : memref<1x8x1280xf32, #tpu.memory_space<vmem>>, vector<1x8x384xf32>
    %43 = vector.shape_cast %42 : vector<1x8x384xf32> to vector<8x384xf32>
    %c24_47 = arith.constant 24 : index
    %c384_48 = arith.constant 384 : index
    %44 = vector.load %arg7[%c24_47, %c384_48] : memref<72x768xf32, #tpu.memory_space<vmem>>, vector<8x384xf32>
    tpu.vector_store %arg7[%c24_47, %c384_48], %43 {strides = array<i32>} : memref<72x768xf32, #tpu.memory_space<vmem>>, vector<8x384xf32>,
    %c0_49 = arith.constant 0 : index
    %c0_50 = arith.constant 0 : index
    %c768 = arith.constant 768 : index
    %45 = vector.load %arg1[%c0_49, %c0_50, %c768] : memref<1x8x1280xf32, #tpu.memory_space<vmem>>, vector<1x8x384xf32>
    %46 = vector.shape_cast %45 : vector<1x8x384xf32> to vector<8x384xf32>
    %c32_51 = arith.constant 32 : index
    %c384_52 = arith.constant 384 : index
    %47 = vector.load %arg7[%c32_51, %c384_52] : memref<72x768xf32, #tpu.memory_space<vmem>>, vector<8x384xf32>
    tpu.vector_store %arg7[%c32_51, %c384_52], %46 {strides = array<i32>} : memref<72x768xf32, #tpu.memory_space<vmem>>, vector<8x384xf32>,
    %c0_53 = arith.constant 0 : index
    %c0_54 = arith.constant 0 : index
    %c769 = arith.constant 769 : index
    %48 = vector.load %arg1[%c0_53, %c0_54, %c769] : memref<1x8x1280xf32, #tpu.memory_space<vmem>>, vector<1x8x384xf32>
    %49 = vector.shape_cast %48 : vector<1x8x384xf32> to vector<8x384xf32>
    %c40_55 = arith.constant 40 : index
    %c384_56 = arith.constant 384 : index
    %50 = vector.load %arg7[%c40_55, %c384_56] : memref<72x768xf32, #tpu.memory_space<vmem>>, vector<8x384xf32>
    tpu.vector_store %arg7[%c40_55, %c384_56], %49 {strides = array<i32>} : memref<72x768xf32, #tpu.memory_space<vmem>>, vector<8x384xf32>,
    %c0_57 = arith.constant 0 : index
    %c0_58 = arith.constant 0 : index
    %c785 = arith.constant 785 : index
    %51 = vector.load %arg1[%c0_57, %c0_58, %c785] : memref<1x8x1280xf32, #tpu.memory_space<vmem>>, vector<1x8x384xf32>
    %52 = vector.shape_cast %51 : vector<1x8x384xf32> to vector<8x384xf32>
    %c48_59 = arith.constant 48 : index
    %c384_60 = arith.constant 384 : index
    %53 = vector.load %arg7[%c48_59, %c384_60] : memref<72x768xf32, #tpu.memory_space<vmem>>, vector<8x384xf32>
    tpu.vector_store %arg7[%c48_59, %c384_60], %52 {strides = array<i32>} : memref<72x768xf32, #tpu.memory_space<vmem>>, vector<8x384xf32>,
    %c0_61 = arith.constant 0 : index
    %c0_62 = arith.constant 0 : index
    %c786 = arith.constant 786 : index
    %54 = vector.load %arg1[%c0_61, %c0_62, %c786] : memref<1x8x1280xf32, #tpu.memory_space<vmem>>, vector<1x8x384xf32>
    %55 = vector.shape_cast %54 : vector<1x8x384xf32> to vector<8x384xf32>
    %c56_63 = arith.constant 56 : index
    %c384_64 = arith.constant 384 : index
    %56 = vector.load %arg7[%c56_63, %c384_64] : memref<72x768xf32, #tpu.memory_space<vmem>>, vector<8x384xf32>
    tpu.vector_store %arg7[%c56_63, %c384_64], %55 {strides = array<i32>} : memref<72x768xf32, #tpu.memory_space<vmem>>, vector<8x384xf32>,
    %c0_65 = arith.constant 0 : index
    %c0_66 = arith.constant 0 : index
    %c787 = arith.constant 787 : index
    %57 = vector.load %arg1[%c0_65, %c0_66, %c787] : memref<1x8x1280xf32, #tpu.memory_space<vmem>>, vector<1x8x384xf32>
    %58 = vector.shape_cast %57 : vector<1x8x384xf32> to vector<8x384xf32>
    %c64_67 = arith.constant 64 : index
    %c384_68 = arith.constant 384 : index
    %59 = vector.load %arg7[%c64_67, %c384_68] : memref<72x768xf32, #tpu.memory_space<vmem>>, vector<8x384xf32>
    tpu.vector_store %arg7[%c64_67, %c384_68], %58 {strides = array<i32>} : memref<72x768xf32, #tpu.memory_space<vmem>>, vector<8x384xf32>,
    %c0_69 = arith.constant 0 : index
    %c0_70 = arith.constant 0 : index
    %c0_71 = arith.constant 0 : index
    %60 = vector.load %arg2[%c0_69, %c0_70, %c0_71] : memref<3x8x72xf32, #tpu.memory_space<vmem>>, vector<1x8x72xf32>
    %61 = vector.shape_cast %60 : vector<1x8x72xf32> to vector<8x72xf32>
    %c0_72 = arith.constant 0 : index
    %c0_73 = arith.constant 0 : index
    %62 = vector.load %arg7[%c0_72, %c0_73] : memref<72x768xf32, #tpu.memory_space<vmem>>, vector<72x768xf32>
    %cst_74 = arith.constant dense<0.000000e+00> : vector<8x768xf32>
    %63 = tpu.matmul %61, %62, %cst_74 {dimension_numbers = #tpu.dot_dimension_numbers<[1], [0], [0], [1], [0, 0, 1, 1], [], []>} : vector<8x72xf32>, vector<72x768xf32>, vector<8x768xf32> -> vector<8x768xf32>
    %c0_75 = arith.constant 0 : index
    %c0_76 = arith.constant 0 : index
    %c0_77 = arith.constant 0 : index
    %64 = vector.load %arg3[%c0_75, %c0_76, %c0_77] : memref<3x8x1xf32, #tpu.memory_space<vmem>>, vector<1x8x1xf32>
    %65 = vector.shape_cast %64 : vector<1x8x1xf32> to vector<8x1xf32>
    %66 = vector.broadcast %65 : vector<8x1xf32> to vector<8x768xf32>
    %67 = arith.addf %63, %66 : vector<8x768xf32>
    %cst_78 = arith.constant 0.000000e+00 : f32
    %68 = vector.broadcast %cst_78 : f32 to vector<8x768xf32>
    %69 = arith.maximumf %67, %68 : vector<8x768xf32>
    %70 = vector.broadcast %5 : vector<1x768xf32> to vector<8x768xf32>
    %71 = arith.mulf %69, %70 : vector<8x768xf32>
    %72 = vector.extract_strided_slice %71 {offsets = [0, 0], sizes = [8, 384], strides = [1, 1]} : vector<8x768xf32> to vector<8x384xf32>
    %c0_79 = arith.constant 0 : index
    %c128_80 = arith.constant 128 : index
    %73 = vector.load %arg6[%c0_79, %c128_80] : memref<8x1280xf32, #tpu.memory_space<vmem>>, vector<8x384xf32>
    tpu.vector_store %arg6[%c0_79, %c128_80], %72 {strides = array<i32>} : memref<8x1280xf32, #tpu.memory_space<vmem>>, vector<8x384xf32>,
    %74 = vector.extract_strided_slice %71 {offsets = [0, 384], sizes = [8, 384], strides = [1, 1]} : vector<8x768xf32> to vector<8x384xf32>
    %c0_81 = arith.constant 0 : index
    %c768_82 = arith.constant 768 : index
    %75 = vector.load %arg6[%c0_81, %c768_82] : memref<8x1280xf32, #tpu.memory_space<vmem>>, vector<8x384xf32>
    tpu.vector_store %arg6[%c0_81, %c768_82], %74 {strides = array<i32>} : memref<8x1280xf32, #tpu.memory_space<vmem>>, vector<8x384xf32>,
    %c0_83 = arith.constant 0 : index
    %c109_84 = arith.constant 109 : index
    %76 = vector.load %arg6[%c0_83, %c109_84] : memref<8x1280xf32, #tpu.memory_space<vmem>>, vector<8x384xf32>
    %c0_85 = arith.constant 0 : index
    %c0_86 = arith.constant 0 : index
    %77 = vector.load %arg7[%c0_85, %c0_86] : memref<72x768xf32, #tpu.memory_space<vmem>>, vector<8x384xf32>
    tpu.vector_store %arg7[%c0_85, %c0_86], %76 {strides = array<i32>} : memref<72x768xf32, #tpu.memory_space<vmem>>, vector<8x384xf32>,
    %c0_87 = arith.constant 0 : index
    %c110_88 = arith.constant 110 : index
    %78 = vector.load %arg6[%c0_87, %c110_88] : memref<8x1280xf32, #tpu.memory_space<vmem>>, vector<8x384xf32>
    %c8_89 = arith.constant 8 : index
    %c0_90 = arith.constant 0 : index
    %79 = vector.load %arg7[%c8_89, %c0_90] : memref<72x768xf32, #tpu.memory_space<vmem>>, vector<8x384xf32>
    tpu.vector_store %arg7[%c8_89, %c0_90], %78 {strides = array<i32>} : memref<72x768xf32, #tpu.memory_space<vmem>>, vector<8x384xf32>,
    %c0_91 = arith.constant 0 : index
    %c111_92 = arith.constant 111 : index
    %80 = vector.load %arg6[%c0_91, %c111_92] : memref<8x1280xf32, #tpu.memory_space<vmem>>, vector<8x384xf32>
    %c16_93 = arith.constant 16 : index
    %c0_94 = arith.constant 0 : index
    %81 = vector.load %arg7[%c16_93, %c0_94] : memref<72x768xf32, #tpu.memory_space<vmem>>, vector<8x384xf32>
    tpu.vector_store %arg7[%c16_93, %c0_94], %80 {strides = array<i32>} : memref<72x768xf32, #tpu.memory_space<vmem>>, vector<8x384xf32>,
    %c0_95 = arith.constant 0 : index
    %c127_96 = arith.constant 127 : index
    %82 = vector.load %arg6[%c0_95, %c127_96] : memref<8x1280xf32, #tpu.memory_space<vmem>>, vector<8x384xf32>
    %c24_97 = arith.constant 24 : index
    %c0_98 = arith.constant 0 : index
    %83 = vector.load %arg7[%c24_97, %c0_98] : memref<72x768xf32, #tpu.memory_space<vmem>>, vector<8x384xf32>
    tpu.vector_store %arg7[%c24_97, %c0_98], %82 {strides = array<i32>} : memref<72x768xf32, #tpu.memory_space<vmem>>, vector<8x384xf32>,
    %c0_99 = arith.constant 0 : index
    %c128_100 = arith.constant 128 : index
    %84 = vector.load %arg6[%c0_99, %c128_100] : memref<8x1280xf32, #tpu.memory_space<vmem>>, vector<8x384xf32>
    %c32_101 = arith.constant 32 : index
    %c0_102 = arith.constant 0 : index
    %85 = vector.load %arg7[%c32_101, %c0_102] : memref<72x768xf32, #tpu.memory_space<vmem>>, vector<8x384xf32>
    tpu.vector_store %arg7[%c32_101, %c0_102], %84 {strides = array<i32>} : memref<72x768xf32, #tpu.memory_space<vmem>>, vector<8x384xf32>,
    %c0_103 = arith.constant 0 : index
    %c129_104 = arith.constant 129 : index
    %86 = vector.load %arg6[%c0_103, %c129_104] : memref<8x1280xf32, #tpu.memory_space<vmem>>, vector<8x384xf32>
    %c40_105 = arith.constant 40 : index
    %c0_106 = arith.constant 0 : index
    %87 = vector.load %arg7[%c40_105, %c0_106] : memref<72x768xf32, #tpu.memory_space<vmem>>, vector<8x384xf32>
    tpu.vector_store %arg7[%c40_105, %c0_106], %86 {strides = array<i32>} : memref<72x768xf32, #tpu.memory_space<vmem>>, vector<8x384xf32>,
    %c0_107 = arith.constant 0 : index
    %c145_108 = arith.constant 145 : index
    %88 = vector.load %arg6[%c0_107, %c145_108] : memref<8x1280xf32, #tpu.memory_space<vmem>>, vector<8x384xf32>
    %c48_109 = arith.constant 48 : index
    %c0_110 = arith.constant 0 : index
    %89 = vector.load %arg7[%c48_109, %c0_110] : memref<72x768xf32, #tpu.memory_space<vmem>>, vector<8x384xf32>
    tpu.vector_store %arg7[%c48_109, %c0_110], %88 {strides = array<i32>} : memref<72x768xf32, #tpu.memory_space<vmem>>, vector<8x384xf32>,
    %c0_111 = arith.constant 0 : index
    %c146_112 = arith.constant 146 : index
    %90 = vector.load %arg6[%c0_111, %c146_112] : memref<8x1280xf32, #tpu.memory_space<vmem>>, vector<8x384xf32>
    %c56_113 = arith.constant 56 : index
    %c0_114 = arith.constant 0 : index
    %91 = vector.load %arg7[%c56_113, %c0_114] : memref<72x768xf32, #tpu.memory_space<vmem>>, vector<8x384xf32>
    tpu.vector_store %arg7[%c56_113, %c0_114], %90 {strides = array<i32>} : memref<72x768xf32, #tpu.memory_space<vmem>>, vector<8x384xf32>,
    %c0_115 = arith.constant 0 : index
    %c147_116 = arith.constant 147 : index
    %92 = vector.load %arg6[%c0_115, %c147_116] : memref<8x1280xf32, #tpu.memory_space<vmem>>, vector<8x384xf32>
    %c64_117 = arith.constant 64 : index
    %c0_118 = arith.constant 0 : index
    %93 = vector.load %arg7[%c64_117, %c0_118] : memref<72x768xf32, #tpu.memory_space<vmem>>, vector<8x384xf32>
    tpu.vector_store %arg7[%c64_117, %c0_118], %92 {strides = array<i32>} : memref<72x768xf32, #tpu.memory_space<vmem>>, vector<8x384xf32>,
    %c0_119 = arith.constant 0 : index
    %c749_120 = arith.constant 749 : index
    %94 = vector.load %arg6[%c0_119, %c749_120] : memref<8x1280xf32, #tpu.memory_space<vmem>>, vector<8x384xf32>
    %c0_121 = arith.constant 0 : index
    %c384_122 = arith.constant 384 : index
    %95 = vector.load %arg7[%c0_121, %c384_122] : memref<72x768xf32, #tpu.memory_space<vmem>>, vector<8x384xf32>
    tpu.vector_store %arg7[%c0_121, %c384_122], %94 {strides = array<i32>} : memref<72x768xf32, #tpu.memory_space<vmem>>, vector<8x384xf32>,
    %c0_123 = arith.constant 0 : index
    %c750_124 = arith.constant 750 : index
    %96 = vector.load %arg6[%c0_123, %c750_124] : memref<8x1280xf32, #tpu.memory_space<vmem>>, vector<8x384xf32>
    %c8_125 = arith.constant 8 : index
    %c384_126 = arith.constant 384 : index
    %97 = vector.load %arg7[%c8_125, %c384_126] : memref<72x768xf32, #tpu.memory_space<vmem>>, vector<8x384xf32>
    tpu.vector_store %arg7[%c8_125, %c384_126], %96 {strides = array<i32>} : memref<72x768xf32, #tpu.memory_space<vmem>>, vector<8x384xf32>,
    %c0_127 = arith.constant 0 : index
    %c751_128 = arith.constant 751 : index
    %98 = vector.load %arg6[%c0_127, %c751_128] : memref<8x1280xf32, #tpu.memory_space<vmem>>, vector<8x384xf32>
    %c16_129 = arith.constant 16 : index
    %c384_130 = arith.constant 384 : index
    %99 = vector.load %arg7[%c16_129, %c384_130] : memref<72x768xf32, #tpu.memory_space<vmem>>, vector<8x384xf32>
    tpu.vector_store %arg7[%c16_129, %c384_130], %98 {strides = array<i32>} : memref<72x768xf32, #tpu.memory_space<vmem>>, vector<8x384xf32>,
    %c0_131 = arith.constant 0 : index
    %c767_132 = arith.constant 767 : index
    %100 = vector.load %arg6[%c0_131, %c767_132] : memref<8x1280xf32, #tpu.memory_space<vmem>>, vector<8x384xf32>
    %c24_133 = arith.constant 24 : index
    %c384_134 = arith.constant 384 : index
    %101 = vector.load %arg7[%c24_133, %c384_134] : memref<72x768xf32, #tpu.memory_space<vmem>>, vector<8x384xf32>
    tpu.vector_store %arg7[%c24_133, %c384_134], %100 {strides = array<i32>} : memref<72x768xf32, #tpu.memory_space<vmem>>, vector<8x384xf32>,
    %c0_135 = arith.constant 0 : index
    %c768_136 = arith.constant 768 : index
    %102 = vector.load %arg6[%c0_135, %c768_136] : memref<8x1280xf32, #tpu.memory_space<vmem>>, vector<8x384xf32>
    %c32_137 = arith.constant 32 : index
    %c384_138 = arith.constant 384 : index
    %103 = vector.load %arg7[%c32_137, %c384_138] : memref<72x768xf32, #tpu.memory_space<vmem>>, vector<8x384xf32>
    tpu.vector_store %arg7[%c32_137, %c384_138], %102 {strides = array<i32>} : memref<72x768xf32, #tpu.memory_space<vmem>>, vector<8x384xf32>,
    %c0_139 = arith.constant 0 : index
    %c769_140 = arith.constant 769 : index
    %104 = vector.load %arg6[%c0_139, %c769_140] : memref<8x1280xf32, #tpu.memory_space<vmem>>, vector<8x384xf32>
    %c40_141 = arith.constant 40 : index
    %c384_142 = arith.constant 384 : index
    %105 = vector.load %arg7[%c40_141, %c384_142] : memref<72x768xf32, #tpu.memory_space<vmem>>, vector<8x384xf32>
    tpu.vector_store %arg7[%c40_141, %c384_142], %104 {strides = array<i32>} : memref<72x768xf32, #tpu.memory_space<vmem>>, vector<8x384xf32>,
    %c0_143 = arith.constant 0 : index
    %c785_144 = arith.constant 785 : index
    %106 = vector.load %arg6[%c0_143, %c785_144] : memref<8x1280xf32, #tpu.memory_space<vmem>>, vector<8x384xf32>
    %c48_145 = arith.constant 48 : index
    %c384_146 = arith.constant 384 : index
    %107 = vector.load %arg7[%c48_145, %c384_146] : memref<72x768xf32, #tpu.memory_space<vmem>>, vector<8x384xf32>
    tpu.vector_store %arg7[%c48_145, %c384_146], %106 {strides = array<i32>} : memref<72x768xf32, #tpu.memory_space<vmem>>, vector<8x384xf32>,
    %c0_147 = arith.constant 0 : index
    %c786_148 = arith.constant 786 : index
    %108 = vector.load %arg6[%c0_147, %c786_148] : memref<8x1280xf32, #tpu.memory_space<vmem>>, vector<8x384xf32>
    %c56_149 = arith.constant 56 : index
    %c384_150 = arith.constant 384 : index
    %109 = vector.load %arg7[%c56_149, %c384_150] : memref<72x768xf32, #tpu.memory_space<vmem>>, vector<8x384xf32>
    tpu.vector_store %arg7[%c56_149, %c384_150], %108 {strides = array<i32>} : memref<72x768xf32, #tpu.memory_space<vmem>>, vector<8x384xf32>,
    %c0_151 = arith.constant 0 : index
    %c787_152 = arith.constant 787 : index
    %110 = vector.load %arg6[%c0_151, %c787_152] : memref<8x1280xf32, #tpu.memory_space<vmem>>, vector<8x384xf32>
    %c64_153 = arith.constant 64 : index
    %c384_154 = arith.constant 384 : index
    %111 = vector.load %arg7[%c64_153, %c384_154] : memref<72x768xf32, #tpu.memory_space<vmem>>, vector<8x384xf32>
    tpu.vector_store %arg7[%c64_153, %c384_154], %110 {strides = array<i32>} : memref<72x768xf32, #tpu.memory_space<vmem>>, vector<8x384xf32>,
    %c1 = arith.constant 1 : index
    %c0_155 = arith.constant 0 : index
    %c0_156 = arith.constant 0 : index
    %112 = vector.load %arg2[%c1, %c0_155, %c0_156] : memref<3x8x72xf32, #tpu.memory_space<vmem>>, vector<1x8x72xf32>
    %113 = vector.shape_cast %112 : vector<1x8x72xf32> to vector<8x72xf32>
    %c0_157 = arith.constant 0 : index
    %c0_158 = arith.constant 0 : index
    %114 = vector.load %arg7[%c0_157, %c0_158] : memref<72x768xf32, #tpu.memory_space<vmem>>, vector<72x768xf32>
    %cst_159 = arith.constant dense<0.000000e+00> : vector<8x768xf32>
    %115 = tpu.matmul %113, %114, %cst_159 {dimension_numbers = #tpu.dot_dimension_numbers<[1], [0], [0], [1], [0, 0, 1, 1], [], []>} : vector<8x72xf32>, vector<72x768xf32>, vector<8x768xf32> -> vector<8x768xf32>
    %c1_160 = arith.constant 1 : index
    %c0_161 = arith.constant 0 : index
    %c0_162 = arith.constant 0 : index
    %116 = vector.load %arg3[%c1_160, %c0_161, %c0_162] : memref<3x8x1xf32, #tpu.memory_space<vmem>>, vector<1x8x1xf32>
    %117 = vector.shape_cast %116 : vector<1x8x1xf32> to vector<8x1xf32>
    %118 = vector.broadcast %117 : vector<8x1xf32> to vector<8x768xf32>
    %119 = arith.addf %115, %118 : vector<8x768xf32>
    %cst_163 = arith.constant 0.000000e+00 : f32
    %120 = vector.broadcast %cst_163 : f32 to vector<8x768xf32>
    %121 = arith.maximumf %119, %120 : vector<8x768xf32>
    %122 = vector.broadcast %5 : vector<1x768xf32> to vector<8x768xf32>
    %123 = arith.mulf %121, %122 : vector<8x768xf32>
    %124 = vector.extract_strided_slice %123 {offsets = [0, 0], sizes = [8, 384], strides = [1, 1]} : vector<8x768xf32> to vector<8x384xf32>
    %c0_164 = arith.constant 0 : index
    %c128_165 = arith.constant 128 : index
    %125 = vector.load %arg6[%c0_164, %c128_165] : memref<8x1280xf32, #tpu.memory_space<vmem>>, vector<8x384xf32>
    tpu.vector_store %arg6[%c0_164, %c128_165], %124 {strides = array<i32>} : memref<8x1280xf32, #tpu.memory_space<vmem>>, vector<8x384xf32>,
    %126 = vector.extract_strided_slice %123 {offsets = [0, 384], sizes = [8, 384], strides = [1, 1]} : vector<8x768xf32> to vector<8x384xf32>
    %c0_166 = arith.constant 0 : index
    %c768_167 = arith.constant 768 : index
    %127 = vector.load %arg6[%c0_166, %c768_167] : memref<8x1280xf32, #tpu.memory_space<vmem>>, vector<8x384xf32>
    tpu.vector_store %arg6[%c0_166, %c768_167], %126 {strides = array<i32>} : memref<8x1280xf32, #tpu.memory_space<vmem>>, vector<8x384xf32>,
    %c0_168 = arith.constant 0 : index
    %c109_169 = arith.constant 109 : index
    %128 = vector.load %arg6[%c0_168, %c109_169] : memref<8x1280xf32, #tpu.memory_space<vmem>>, vector<8x384xf32>
    %c0_170 = arith.constant 0 : index
    %c0_171 = arith.constant 0 : index
    %129 = vector.load %arg7[%c0_170, %c0_171] : memref<72x768xf32, #tpu.memory_space<vmem>>, vector<8x384xf32>
    tpu.vector_store %arg7[%c0_170, %c0_171], %128 {strides = array<i32>} : memref<72x768xf32, #tpu.memory_space<vmem>>, vector<8x384xf32>,
    %c0_172 = arith.constant 0 : index
    %c110_173 = arith.constant 110 : index
    %130 = vector.load %arg6[%c0_172, %c110_173] : memref<8x1280xf32, #tpu.memory_space<vmem>>, vector<8x384xf32>
    %c8_174 = arith.constant 8 : index
    %c0_175 = arith.constant 0 : index
    %131 = vector.load %arg7[%c8_174, %c0_175] : memref<72x768xf32, #tpu.memory_space<vmem>>, vector<8x384xf32>
    tpu.vector_store %arg7[%c8_174, %c0_175], %130 {strides = array<i32>} : memref<72x768xf32, #tpu.memory_space<vmem>>, vector<8x384xf32>,
    %c0_176 = arith.constant 0 : index
    %c111_177 = arith.constant 111 : index
    %132 = vector.load %arg6[%c0_176, %c111_177] : memref<8x1280xf32, #tpu.memory_space<vmem>>, vector<8x384xf32>
    %c16_178 = arith.constant 16 : index
    %c0_179 = arith.constant 0 : index
    %133 = vector.load %arg7[%c16_178, %c0_179] : memref<72x768xf32, #tpu.memory_space<vmem>>, vector<8x384xf32>
    tpu.vector_store %arg7[%c16_178, %c0_179], %132 {strides = array<i32>} : memref<72x768xf32, #tpu.memory_space<vmem>>, vector<8x384xf32>,
    %c0_180 = arith.constant 0 : index
    %c127_181 = arith.constant 127 : index
    %134 = vector.load %arg6[%c0_180, %c127_181] : memref<8x1280xf32, #tpu.memory_space<vmem>>, vector<8x384xf32>
    %c24_182 = arith.constant 24 : index
    %c0_183 = arith.constant 0 : index
    %135 = vector.load %arg7[%c24_182, %c0_183] : memref<72x768xf32, #tpu.memory_space<vmem>>, vector<8x384xf32>
    tpu.vector_store %arg7[%c24_182, %c0_183], %134 {strides = array<i32>} : memref<72x768xf32, #tpu.memory_space<vmem>>, vector<8x384xf32>,
    %c0_184 = arith.constant 0 : index
    %c128_185 = arith.constant 128 : index
    %136 = vector.load %arg6[%c0_184, %c128_185] : memref<8x1280xf32, #tpu.memory_space<vmem>>, vector<8x384xf32>
    %c32_186 = arith.constant 32 : index
    %c0_187 = arith.constant 0 : index
    %137 = vector.load %arg7[%c32_186, %c0_187] : memref<72x768xf32, #tpu.memory_space<vmem>>, vector<8x384xf32>
    tpu.vector_store %arg7[%c32_186, %c0_187], %136 {strides = array<i32>} : memref<72x768xf32, #tpu.memory_space<vmem>>, vector<8x384xf32>,
    %c0_188 = arith.constant 0 : index
    %c129_189 = arith.constant 129 : index
    %138 = vector.load %arg6[%c0_188, %c129_189] : memref<8x1280xf32, #tpu.memory_space<vmem>>, vector<8x384xf32>
    %c40_190 = arith.constant 40 : index
    %c0_191 = arith.constant 0 : index
    %139 = vector.load %arg7[%c40_190, %c0_191] : memref<72x768xf32, #tpu.memory_space<vmem>>, vector<8x384xf32>
    tpu.vector_store %arg7[%c40_190, %c0_191], %138 {strides = array<i32>} : memref<72x768xf32, #tpu.memory_space<vmem>>, vector<8x384xf32>,
    %c0_192 = arith.constant 0 : index
    %c145_193 = arith.constant 145 : index
    %140 = vector.load %arg6[%c0_192, %c145_193] : memref<8x1280xf32, #tpu.memory_space<vmem>>, vector<8x384xf32>
    %c48_194 = arith.constant 48 : index
    %c0_195 = arith.constant 0 : index
    %141 = vector.load %arg7[%c48_194, %c0_195] : memref<72x768xf32, #tpu.memory_space<vmem>>, vector<8x384xf32>
    tpu.vector_store %arg7[%c48_194, %c0_195], %140 {strides = array<i32>} : memref<72x768xf32, #tpu.memory_space<vmem>>, vector<8x384xf32>,
    %c0_196 = arith.constant 0 : index
    %c146_197 = arith.constant 146 : index
    %142 = vector.load %arg6[%c0_196, %c146_197] : memref<8x1280xf32, #tpu.memory_space<vmem>>, vector<8x384xf32>
    %c56_198 = arith.constant 56 : index
    %c0_199 = arith.constant 0 : index
    %143 = vector.load %arg7[%c56_198, %c0_199] : memref<72x768xf32, #tpu.memory_space<vmem>>, vector<8x384xf32>
    tpu.vector_store %arg7[%c56_198, %c0_199], %142 {strides = array<i32>} : memref<72x768xf32, #tpu.memory_space<vmem>>, vector<8x384xf32>,
    %c0_200 = arith.constant 0 : index
    %c147_201 = arith.constant 147 : index
    %144 = vector.load %arg6[%c0_200, %c147_201] : memref<8x1280xf32, #tpu.memory_space<vmem>>, vector<8x384xf32>
    %c64_202 = arith.constant 64 : index
    %c0_203 = arith.constant 0 : index
    %145 = vector.load %arg7[%c64_202, %c0_203] : memref<72x768xf32, #tpu.memory_space<vmem>>, vector<8x384xf32>
    tpu.vector_store %arg7[%c64_202, %c0_203], %144 {strides = array<i32>} : memref<72x768xf32, #tpu.memory_space<vmem>>, vector<8x384xf32>,
    %c0_204 = arith.constant 0 : index
    %c749_205 = arith.constant 749 : index
    %146 = vector.load %arg6[%c0_204, %c749_205] : memref<8x1280xf32, #tpu.memory_space<vmem>>, vector<8x384xf32>
    %c0_206 = arith.constant 0 : index
    %c384_207 = arith.constant 384 : index
    %147 = vector.load %arg7[%c0_206, %c384_207] : memref<72x768xf32, #tpu.memory_space<vmem>>, vector<8x384xf32>
    tpu.vector_store %arg7[%c0_206, %c384_207], %146 {strides = array<i32>} : memref<72x768xf32, #tpu.memory_space<vmem>>, vector<8x384xf32>,
    %c0_208 = arith.constant 0 : index
    %c750_209 = arith.constant 750 : index
    %148 = vector.load %arg6[%c0_208, %c750_209] : memref<8x1280xf32, #tpu.memory_space<vmem>>, vector<8x384xf32>
    %c8_210 = arith.constant 8 : index
    %c384_211 = arith.constant 384 : index
    %149 = vector.load %arg7[%c8_210, %c384_211] : memref<72x768xf32, #tpu.memory_space<vmem>>, vector<8x384xf32>
    tpu.vector_store %arg7[%c8_210, %c384_211], %148 {strides = array<i32>} : memref<72x768xf32, #tpu.memory_space<vmem>>, vector<8x384xf32>,
    %c0_212 = arith.constant 0 : index
    %c751_213 = arith.constant 751 : index
    %150 = vector.load %arg6[%c0_212, %c751_213] : memref<8x1280xf32, #tpu.memory_space<vmem>>, vector<8x384xf32>
    %c16_214 = arith.constant 16 : index
    %c384_215 = arith.constant 384 : index
    %151 = vector.load %arg7[%c16_214, %c384_215] : memref<72x768xf32, #tpu.memory_space<vmem>>, vector<8x384xf32>
    tpu.vector_store %arg7[%c16_214, %c384_215], %150 {strides = array<i32>} : memref<72x768xf32, #tpu.memory_space<vmem>>, vector<8x384xf32>,
    %c0_216 = arith.constant 0 : index
    %c767_217 = arith.constant 767 : index
    %152 = vector.load %arg6[%c0_216, %c767_217] : memref<8x1280xf32, #tpu.memory_space<vmem>>, vector<8x384xf32>
    %c24_218 = arith.constant 24 : index
    %c384_219 = arith.constant 384 : index
    %153 = vector.load %arg7[%c24_218, %c384_219] : memref<72x768xf32, #tpu.memory_space<vmem>>, vector<8x384xf32>
    tpu.vector_store %arg7[%c24_218, %c384_219], %152 {strides = array<i32>} : memref<72x768xf32, #tpu.memory_space<vmem>>, vector<8x384xf32>,
    %c0_220 = arith.constant 0 : index
    %c768_221 = arith.constant 768 : index
    %154 = vector.load %arg6[%c0_220, %c768_221] : memref<8x1280xf32, #tpu.memory_space<vmem>>, vector<8x384xf32>
    %c32_222 = arith.constant 32 : index
    %c384_223 = arith.constant 384 : index
    %155 = vector.load %arg7[%c32_222, %c384_223] : memref<72x768xf32, #tpu.memory_space<vmem>>, vector<8x384xf32>
    tpu.vector_store %arg7[%c32_222, %c384_223], %154 {strides = array<i32>} : memref<72x768xf32, #tpu.memory_space<vmem>>, vector<8x384xf32>,
    %c0_224 = arith.constant 0 : index
    %c769_225 = arith.constant 769 : index
    %156 = vector.load %arg6[%c0_224, %c769_225] : memref<8x1280xf32, #tpu.memory_space<vmem>>, vector<8x384xf32>
    %c40_226 = arith.constant 40 : index
    %c384_227 = arith.constant 384 : index
    %157 = vector.load %arg7[%c40_226, %c384_227] : memref<72x768xf32, #tpu.memory_space<vmem>>, vector<8x384xf32>
    tpu.vector_store %arg7[%c40_226, %c384_227], %156 {strides = array<i32>} : memref<72x768xf32, #tpu.memory_space<vmem>>, vector<8x384xf32>,
    %c0_228 = arith.constant 0 : index
    %c785_229 = arith.constant 785 : index
    %158 = vector.load %arg6[%c0_228, %c785_229] : memref<8x1280xf32, #tpu.memory_space<vmem>>, vector<8x384xf32>
    %c48_230 = arith.constant 48 : index
    %c384_231 = arith.constant 384 : index
    %159 = vector.load %arg7[%c48_230, %c384_231] : memref<72x768xf32, #tpu.memory_space<vmem>>, vector<8x384xf32>
    tpu.vector_store %arg7[%c48_230, %c384_231], %158 {strides = array<i32>} : memref<72x768xf32, #tpu.memory_space<vmem>>, vector<8x384xf32>,
    %c0_232 = arith.constant 0 : index
    %c786_233 = arith.constant 786 : index
    %160 = vector.load %arg6[%c0_232, %c786_233] : memref<8x1280xf32, #tpu.memory_space<vmem>>, vector<8x384xf32>
    %c56_234 = arith.constant 56 : index
    %c384_235 = arith.constant 384 : index
    %161 = vector.load %arg7[%c56_234, %c384_235] : memref<72x768xf32, #tpu.memory_space<vmem>>, vector<8x384xf32>
    tpu.vector_store %arg7[%c56_234, %c384_235], %160 {strides = array<i32>} : memref<72x768xf32, #tpu.memory_space<vmem>>, vector<8x384xf32>,
    %c0_236 = arith.constant 0 : index
    %c787_237 = arith.constant 787 : index
    %162 = vector.load %arg6[%c0_236, %c787_237] : memref<8x1280xf32, #tpu.memory_space<vmem>>, vector<8x384xf32>
    %c64_238 = arith.constant 64 : index
    %c384_239 = arith.constant 384 : index
    %163 = vector.load %arg7[%c64_238, %c384_239] : memref<72x768xf32, #tpu.memory_space<vmem>>, vector<8x384xf32>
    tpu.vector_store %arg7[%c64_238, %c384_239], %162 {strides = array<i32>} : memref<72x768xf32, #tpu.memory_space<vmem>>, vector<8x384xf32>,
    %c2 = arith.constant 2 : index
    %c0_240 = arith.constant 0 : index
    %c0_241 = arith.constant 0 : index
    %164 = vector.load %arg2[%c2, %c0_240, %c0_241] : memref<3x8x72xf32, #tpu.memory_space<vmem>>, vector<1x8x72xf32>
    %165 = vector.shape_cast %164 : vector<1x8x72xf32> to vector<8x72xf32>
    %c0_242 = arith.constant 0 : index
    %c0_243 = arith.constant 0 : index
    %166 = vector.load %arg7[%c0_242, %c0_243] : memref<72x768xf32, #tpu.memory_space<vmem>>, vector<72x768xf32>
    %cst_244 = arith.constant dense<0.000000e+00> : vector<8x768xf32>
    %167 = tpu.matmul %165, %166, %cst_244 {dimension_numbers = #tpu.dot_dimension_numbers<[1], [0], [0], [1], [0, 0, 1, 1], [], []>} : vector<8x72xf32>, vector<72x768xf32>, vector<8x768xf32> -> vector<8x768xf32>
    %c2_245 = arith.constant 2 : index
    %c0_246 = arith.constant 0 : index
    %c0_247 = arith.constant 0 : index
    %168 = vector.load %arg3[%c2_245, %c0_246, %c0_247] : memref<3x8x1xf32, #tpu.memory_space<vmem>>, vector<1x8x1xf32>
    %169 = vector.shape_cast %168 : vector<1x8x1xf32> to vector<8x1xf32>
    %170 = vector.broadcast %169 : vector<8x1xf32> to vector<8x768xf32>
    %171 = arith.addf %167, %170 : vector<8x768xf32>
    %cst_248 = arith.constant 0.000000e+00 : f32
    %172 = vector.broadcast %cst_248 : f32 to vector<8x768xf32>
    %173 = arith.maximumf %171, %172 : vector<8x768xf32>
    %174 = vector.extract_strided_slice %173 {offsets = [0, 0], sizes = [8, 384], strides = [1, 1]} : vector<8x768xf32> to vector<8x384xf32>
    %c0_249 = arith.constant 0 : index
    %c0_250 = arith.constant 0 : index
    %c0_251 = arith.constant 0 : index
    %175 = vector.load %arg5[%c0_249, %c0_250, %c0_251] : memref<2x8x384xf32, #tpu.memory_space<vmem>>, vector<1x8x384xf32>
    %176 = vector.shape_cast %175 : vector<1x8x384xf32> to vector<8x384xf32>
    %177 = vector.shape_cast %174 : vector<8x384xf32> to vector<1x8x384xf32>
    tpu.vector_store %arg5[%c0_249, %c0_250, %c0_251], %177 {strides = array<i32>} : memref<2x8x384xf32, #tpu.memory_space<vmem>>, vector<1x8x384xf32>,
    %178 = vector.extract_strided_slice %173 {offsets = [0, 384], sizes = [8, 384], strides = [1, 1]} : vector<8x768xf32> to vector<8x384xf32>
    %c1_252 = arith.constant 1 : index
    %c0_253 = arith.constant 0 : index
    %c0_254 = arith.constant 0 : index
    %179 = vector.load %arg5[%c1_252, %c0_253, %c0_254] : memref<2x8x384xf32, #tpu.memory_space<vmem>>, vector<1x8x384xf32>
    %180 = vector.shape_cast %179 : vector<1x8x384xf32> to vector<8x384xf32>
    %181 = vector.shape_cast %178 : vector<8x384xf32> to vector<1x8x384xf32>
    tpu.vector_store %arg5[%c1_252, %c0_253, %c0_254], %181 {strides = array<i32>} : memref<2x8x384xf32, #tpu.memory_space<vmem>>, vector<1x8x384xf32>,
    return
  }
  func.func @transform_0(%arg0: i32) -> (i32, i32, i32) {
    %c0_i32 = arith.constant 0 : i32
    %c0_i32_0 = arith.constant 0 : i32
    %c0_i32_1 = arith.constant 0 : i32
    return %arg0, %c0_i32, %c0_i32_0 : i32, i32, i32
  }
  func.func @transform_1(%arg0: i32) -> (i32, i32, i32) {
    %c0_i32 = arith.constant 0 : i32
    %c0_i32_0 = arith.constant 0 : i32
    %c0_i32_1 = arith.constant 0 : i32
    %c0_i32_2 = arith.constant 0 : i32
    return %c0_i32, %c0_i32_0, %c0_i32_1 : i32, i32, i32
  }
  func.func @transform_2(%arg0: i32) -> (i32, i32, i32) {
    %c0_i32 = arith.constant 0 : i32
    %c0_i32_0 = arith.constant 0 : i32
    %c0_i32_1 = arith.constant 0 : i32
    %c0_i32_2 = arith.constant 0 : i32
    return %c0_i32, %c0_i32_0, %c0_i32_1 : i32, i32, i32
  }
  func.func @transform_3(%arg0: i32) -> (i32, i32) {
    %c0_i32 = arith.constant 0 : i32
    %c0_i32_0 = arith.constant 0 : i32
    %c0_i32_1 = arith.constant 0 : i32
    return %c0_i32, %c0_i32_0 : i32, i32
  }
  func.func @transform_4(%arg0: i32) -> (i32, i32, i32) {
    %c0_i32 = arith.constant 0 : i32
    %c0_i32_0 = arith.constant 0 : i32
    %c0_i32_1 = arith.constant 0 : i32
    return %arg0, %c0_i32, %c0_i32_0 : i32, i32, i32
  }
}

</mosaic_0001>

<bundles_post_ra>
// kernel: conv_sequence_forward.1
= control target key start
LH: loop header
LB: loop body
LE: loop exit
PB: predicated region body
PF: predicated region fallthrough
CT: control target
= control target key end

     0   :  { %s3079_s15 = smov 0   ;;  %s3896_s0 = inlined_call_operand.vmem [shape: f32[2,8,1280], index: 0, kind: input, shape index: {}]   ;;  %s3897_s1 = inlined_call_operand.vmem [shape: f32[3,8,72], index: 1, kind: input, shape index: {}]   ;;  %s3898_s2 = inlined_call_operand.vmem [shape: f32[3,8,1], index: 2, kind: input, shape index: {}]   ;;  %s3899_s3 = inlined_call_operand.vmem [shape: f32[1,768], index: 3, kind: input, shape index: {}]   ;;  %s3900_s4 = inlined_call_operand.vmem [shape: f32[4,8,384], index: 4, kind: output, shape index: {}]  }
   0x1 LB: > { %s3085_s16 = sadd.s32 4294967295, %s3042_s15   ;;  %p2428_p0 = scmp.ge.s32.totalorder %s3042_s15, 1  ;;  %s3042_s15 = sphi %s3079_s15, %s14_s15  }
   0x2   : > { %p162_p1 = scmp.lt.s32.totalorder %s3042_s15, 3 }
   0x4   : > { %p163_p2 = pnand %p2428_p0, %p162_p1 }
   0x5   : > { %p189_p3 = scmp.lt.s32.totalorder (!%p163_p2), %s3085_s16, 1  ;;  %s3044_s22 = smov (!%p163_p2), 19   ;;  %v3051_v14 = vmov (!%p163_p2), 0.0   ;;  %v3053_v19 = vmov (!%p163_p2), 0   ;;  %v681_v20 = vld [vmem:[%s3898_s2] sm:$0xff] (!%p163_p2)  ;;  %vm222_vm0 = vcmask (!%p163_p2), 154624  }
   0x6   : > { %166 = sbr.rel (%p163_p2) target bundleno = 1189 (0x4a5), region = 36  ;;  %s3045_s23 = smov (!%p163_p2), 18   ;;  %755 = vmatprep.mubr.f32.mxu0 (!%p163_p2), %v3051_v14  ;;  %826 = vmatprep.mubr.f32.mxu1 (!%p163_p2), %v3051_v14  ;;  %vm248_vm1 = vcmask (!%p163_p2), 146432   ;;  %vm274_vm2 = vcmask (!%p163_p2), 138240   ;;  %vm300_vm3 = vcmask (!%p163_p2), 7168   ;;  %vm332_vm4 = vcmask (!%p163_p2), 1039360  }
   0x7   : > { %s3046_s24 = smov (!%p163_p2), 17   ;;  %s3047_s25 = smov (!%p163_p2), 1   ;;  %3035 = vset.pattern.permute.xlu1 (!%p163_p2), %v3053_v19  ;;  %2754 = vset.pattern.permute.xlu0 (!%p163_p2), %v3053_v19  ;;  %vm358_vm5 = vcmask (!%p163_p2), 908288   ;;  %vm384_vm6 = vcmask (!%p163_p2), 900096   ;;  %vm410_vm7 = vcmask (!%p163_p2), 891904   ;;  %vm687_vm8 = vcmask (!%p163_p2), 588800  }
   0x8   : > { %s3048_s26 = smov (!%p163_p2), 127   ;;  %s3049_s27 = smov (!%p163_p2), 111  }
   0x9   : > { %s3050_s28 = smov (!%p163_p2), 110   ;;  %s3052_s29 = smov (!%p163_p2), 109  }
   0xa   : > { %s2430_s20 = sshll.u32 (!%p163_p2), %s3085_s16, 1 }
   0xb   : > { %p195_p4 = scmp.lt.s32.totalorder (!%p163_p2), %s2430_s20, 3 }
   0xd   : > { %s190_s17 = scalar_select %p189_p3, %s3085_s16, 1 }
   0xe   : > { %s3902_s20 = smov (!%p195_p4, %s2430_s20), 3 }
   0xf   : > { %s2594_s18 = smul.u32 80, %s190_s17 }
  0x11   : > { %s3094_s21 = scalar_lea.vmem %s3896_s0, %s2594_s18 }
  0x12   : > { %v3097_v0 = vld [vmem:[%s3094_s21 + $0x8] sm:$0xff]  ;;  %v3100_v1 = vld [vmem:[%s3094_s21 + $0x10] sm:$0xff]  ;;  %v206_v2 = vld [vmem:[%s3094_s21] sm:$0xff] }
  0x13   : > { %v2614_v3 = vpack.i.bf16 %v3100_v1, %v3097_v0  ;;  %v420_v4 = vld [vmem:[%s3094_s21 + $0x28] sm:$0xff]  ;;  %v3113_v6 = vld [vmem:[%s3094_s21 + $0x18] sm:$0xff]  ;;  %v3116_v7 = vld [vmem:[%s3094_s21 + $0x30] sm:$0xff] }
  0x14   : > { %v2624_v5 = vpack.i.bf16 %v420_v4, %v206_v2  ;;  %v2654_v8 = vpack.i.bf16 %v3113_v6, %v3100_v1  ;;  %v2659_v9 = vpack.i.bf16 %v3116_v7, %v3097_v0  ;;  %v2664_v10 = vpack.i.bf16 %v3113_v6, %v3116_v7  ;;  %v319_v11 = vld [vmem:[%s3094_s21 + $0x20] sm:$0xff]  ;;  %v3136_v12 = vld [vmem:[%s3094_s21 + $0x38] sm:$0xff]  ;;  %v529_v17 = vld [vmem:[%s3094_s21 + $0x48] sm:$0xff] }
  0x15   : > { %2615 = vrot.lane.b32.xlu0 %v2614_v3, %s3044_s22  ;;  %v2704_v13 = vpack.i.bf16 %v319_v11, %v3136_v12  ;;  %v3143_v15 = vld [vmem:[%s3094_s21 + $0x40] sm:$0xff]  ;;  %s2595_s21 = smul.u32 24, %s3902_s20 }
  0x16   : > { %2625 = vrot.lane.b32.xlu1 %v2624_v5, %s3044_s22  ;;  %v2709_v16 = vpack.i.bf16 %v3143_v15, %v3136_v12  ;;  %v2739_v18 = vpack.i.bf16 %v529_v17, %v3143_v15 }
  0x19   : > { %2620 = vrot.lane.b32.xlu0 %v2614_v3, %s3045_s23 }
  0x1a   : > { %2630 = vrot.lane.b32.xlu1 %v2624_v5, %s3045_s23 }
  0x1d   : > { %2635 = vrot.lane.b32.xlu0 %v2614_v3, %s3046_s24 }
  0x1e   : > { %2640 = vrot.lane.b32.xlu1 %v2614_v3, %s3047_s25 }
  0x21   : > { %2645 = vrot.lane.b32.xlu0 %v2624_v5, %s3046_s24 }
  0x22   : > { %2650 = vrot.lane.b32.xlu1 %v2624_v5, %s3047_s25 }
  0x25   : > { %2655 = vrot.lane.b32.xlu0 %v2654_v8, %s3048_s26 }
  0x26   : > { %2660 = vrot.lane.b32.xlu1 %v2659_v9, %s3048_s26 }
  0x29   : > { %2665 = vrot.lane.b32.xlu0 %v2664_v10, %s3044_s22 }
  0x2a   : > { %2670 = vrot.lane.b32.xlu1 %v2664_v10, %s3045_s23 }
  0x2d   : > { %2675 = vrot.lane.b32.xlu0 %v2654_v8, %s3049_s27 }
  0x2e   : > { %2680 = vrot.lane.b32.xlu1 %v2654_v8, %s3050_s28 }
  0x31   : > { %2685 = vrot.lane.b32.xlu0 %v2659_v9, %s3049_s27 }
  0x32   : > { %2690 = vrot.lane.b32.xlu1 %v2659_v9, %s3050_s28 }
  0x35   : > { %2695 = vrot.lane.b32.xlu0 %v2664_v10, %s3046_s24 }
  0x36   : > { %2700 = vrot.lane.b32.xlu1 %v2664_v10, %s3047_s25 }
  0x39   : > { %2705 = vrot.lane.b32.xlu0 %v2704_v13, %s3048_s26 }
  0x3a   : > { %404 = vrot.lane.b32.xlu1 %v3100_v1, %s3052_s29 }
  0x3d   : > { %406 = vrot.lane.b32.xlu0 %v3113_v6, %s3052_s29 }
  0x3e   : > { %2710 = vrot.lane.b32.xlu1 %v2709_v16, %s3044_s22 }
  0x41   : > { %2715 = vrot.lane.b32.xlu0 %v2709_v16, %s3045_s23 }
  0x42   : > { %402 = vrot.lane.b32.xlu1 %v3097_v0, %s3052_s29 }
  0x45   : > { %2720 = vrot.lane.b32.xlu0 %v2704_v13, %s3049_s27 }
  0x46   : > { %2725 = vrot.lane.b32.xlu1 %v2704_v13, %s3050_s28 }
  0x49   : > { %2730 = vrot.lane.b32.xlu0 %v2709_v16, %s3046_s24 }
  0x4a   : > { %2735 = vrot.lane.b32.xlu1 %v2709_v16, %s3047_s25 }
  0x4d   : > { %2740 = vrot.lane.b32.xlu0 %v2739_v18, %s3048_s26 }
  0x4e   : > { %609 = vrot.lane.b32.xlu1 %v3116_v7, %s3052_s29 }
  0x51   : > { %611 = vrot.lane.b32.xlu0 %v3136_v12, %s3052_s29 }
  0x52   : > { %408 = vrot.lane.b32.xlu1 %v319_v11, %s3052_s29 }
  0x55   : > { %2745 = vrot.lane.b32.xlu0 %v2739_v18, %s3049_s27 }
  0x56   : > { %2750 = vrot.lane.b32.xlu1 %v2739_v18, %s3050_s28 }
  0x59   : > { %613 = vrot.lane.b32.xlu0 %v3143_v15, %s3052_s29 }
  0x5a   : > { %615 = vrot.lane.b32.xlu1 %v529_v17, %s3052_s29 }
  0x5d   : > { %684 = vperm.xlu0 %2754, %v681_v20  }
  0x5e   : > { %2761 = vrot.lane.b32.xlu1 %v3051_v14, %s3045_s23 }
  0x61   : > { %2756 = vrot.lane.b32.xlu0 %v3051_v14, %s3044_s22 }
  0x62   : > { %2771 = vrot.lane.b32.xlu1 %v3051_v14, %s3047_s25 }
  0x65   : > { %2766 = vrot.lane.b32.xlu0 %v3051_v14, %s3046_s24 }
  0x87   : > { %v3179_v21 = vpop.permute.xlu0 %2615 }
  0x88   : > { %v2626_v22 = vpop.permute.xlu1 %2625  ;;  %v2618_v23 = vunpack.i.h.bf16 %v3179_v21  ;;  %v2617_v24 = vunpack.i.l.bf16 %v3179_v21 }
  0x89   : > { %v2627_v25 = vunpack.i.l.bf16 %v2626_v22  ;;  %v2628_v62 = vunpack.i.h.bf16 %v2626_v22 }
  0x8a   : > { %v224_v31 = vsel %vm222_vm0, %v2617_v24, %v2618_v23 }
  0x8b   : > { %v2621_v26 = vpop.permute.xlu0 %2620  ;;  %v223_v35 = vsel %vm222_vm0, %v2627_v25, %v2617_v24 }
  0x8c   : > { %v2623_v27 = vunpack.i.h.bf16 %v2621_v26  ;;  %v2622_v28 = vunpack.i.l.bf16 %v2621_v26  ;;  %v2631_v29 = vpop.permute.xlu1 %2630 }
  0x8d   : > { %v2632_v30 = vunpack.i.l.bf16 %v2631_v29  ;;  %v2633_v5 = vunpack.i.h.bf16 %v2631_v29 }
  0x8e   : > { %v250_v32 = vsel %vm248_vm1, %v2622_v28, %v2623_v27 }
  0x8f   : > { %v3185_v33 = vpop.permute.xlu0 %2635  ;;  %v2450_v34 = vpack.c.bf16 %v250_v32, %v224_v31  ;;  %v249_v36 = vsel %vm248_vm1, %v2632_v30, %v2622_v28 }
  0x90   : > { %v2638_v37 = vunpack.i.h.bf16 %v3185_v33  ;;  %v2637_v38 = vunpack.i.l.bf16 %v3185_v33  ;;  %v3191_v39 = vpop.permute.xlu1 %2640  ;;  %v2452_v40 = vpack.c.bf16 %v249_v36, %v223_v35 }
  0x91   : > { %v2643_v41 = vunpack.i.h.bf16 %v3191_v39  ;;  %v2642_v42 = vunpack.i.l.bf16 %v3191_v39  ;;  %2451 = vmatprep.subr.bf16.mxu0 %v2450_v34 }
  0x92   : > { %2453 = vmatpush1.bf16.msra.mxu0 %v2452_v40  ;;  %v276_v43 = vsel %vm274_vm2, %v2637_v38, %v2638_v37 }
  0x93   : > { %v3198_v44 = vpop.permute.xlu0 %2645  ;;  %v302_v45 = vsel %vm300_vm3, %v2642_v42, %v2643_v41 }
  0x94   : > { %v2647_v46 = vunpack.i.l.bf16 %v3198_v44  ;;  %v3204_v47 = vpop.permute.xlu1 %2650  ;;  %v2454_v48 = vpack.c.bf16 %v302_v45, %v276_v43  ;;  %v2648_v34 = vunpack.i.h.bf16 %v3198_v44 }
  0x95   : > { %v2652_v49 = vunpack.i.l.bf16 %v3204_v47 }
  0x96   : > { %2455 = vmatprep.subr.bf16.mxu0 %v2454_v48  ;;  %v275_v50 = vsel %vm274_vm2, %v2647_v46, %v2637_v38 }
  0x97   : > { %v3208_v51 = vpop.permute.xlu0 %2655  ;;  %v301_v52 = vsel %vm300_vm3, %v2652_v49, %v2642_v42  ;;  %v2653_v42 = vunpack.i.h.bf16 %v3204_v47 }
  0x98   : > { %v2658_v53 = vunpack.i.h.bf16 %v3208_v51  ;;  %v2657_v54 = vunpack.i.l.bf16 %v3208_v51  ;;  %v3213_v55 = vpop.permute.xlu1 %2660  ;;  %v2456_v56 = vpack.c.bf16 %v301_v52, %v275_v50 }
  0x99   : > { %v2662_v57 = vunpack.i.l.bf16 %v3213_v55  ;;  %v2663_v48 = vunpack.i.h.bf16 %v3213_v55 }
  0x9a   : > { %2457 = vmatpush1.bf16.msra.mxu0 %v2456_v56  ;;  %v334_v58 = vsel %vm332_vm4, %v2657_v54, %v2658_v53 }
  0x9b   : > { %v3219_v59 = vpop.permute.xlu0 %2665  ;;  %v2458_v60 = vpack.c.bf16 %v334_v58, %v3100_v1  ;;  %v333_v61 = vsel %vm332_vm4, %v2662_v57, %v2657_v54 }
  0x9c   : > { %v2668_v63 = vunpack.i.h.bf16 %v3219_v59  ;;  %v2667_v2 = vunpack.i.l.bf16 %v3219_v59  ;;  %v3225_v3 = vpop.permute.xlu1 %2670  ;;  %v2460_v4 = vpack.c.bf16 %v333_v61, %v3097_v0 }
  0x9d   : > { %v2673_v8 = vunpack.i.h.bf16 %v3225_v3  ;;  %v2672_v9 = vunpack.i.l.bf16 %v3225_v3  ;;  %2459 = vmatprep.subr.bf16.mxu0 %v2458_v60 }
  0x9e   : > { %2461 = vmatpush1.bf16.msra.mxu0 %v2460_v4  ;;  %v436_v1 = vsel %vm222_vm0, %v2628_v62, %v2667_v2  ;;  %v225_v10 = vsel %vm222_vm0, %v2618_v23, %v2668_v63 }
  0x9f   : > { %v3234_v11 = vpop.permute.xlu0 %2675  ;;  %v461_v13 = vsel %vm248_vm1, %v2633_v5, %v2672_v9  ;;  %v251_v0 = vsel %vm248_vm1, %v2623_v27, %v2673_v8  ;;  %v3302_v8 = vld [vmem:[%s3897_s1] sm:$0xff] }
  0xa0   : > { %v2678_v16 = vunpack.i.h.bf16 %v3234_v11  ;;  %v2677_v17 = vunpack.i.l.bf16 %v3234_v11  ;;  %v3242_v18 = vpop.permute.xlu1 %2680  ;;  %v2466_v19 = vpack.c.bf16 %v461_v13, %v436_v1  ;;  %v2468_v20 = vpack.c.bf16 %v251_v0, %v225_v10 }
  0xa1   : > { %v2683_v21 = vunpack.i.h.bf16 %v3242_v18  ;;  %v2682_v22 = vunpack.i.l.bf16 %v3242_v18 }
  0xa2   : > { %2467 = vmatprep.subr.bf16.mxu1 %v2466_v19  ;;  %v360_v23 = vsel %vm358_vm5, %v2677_v17, %v2678_v16 }
  0xa3   : > { %2469 = vmatpush1.bf16.msra.mxu1 %v2468_v20  ;;  %v3249_v24 = vpop.permute.xlu0 %2685  ;;  %v386_v25 = vsel %vm384_vm6, %v2682_v22, %v2683_v21 }
  0xa4   : > { %v2687_v26 = vunpack.i.l.bf16 %v3249_v24  ;;  %v3255_v27 = vpop.permute.xlu1 %2690  ;;  %v2462_v28 = vpack.c.bf16 %v386_v25, %v360_v23  ;;  %v2688_v20 = vunpack.i.h.bf16 %v3249_v24 }
  0xa5   : > { %v2692_v29 = vunpack.i.l.bf16 %v3255_v27  ;;  %v2693_v3 = vunpack.i.h.bf16 %v3255_v27 }
  0xa6   : > { %2463 = vmatprep.subr.bf16.mxu0 %v2462_v28  ;;  %v359_v30 = vsel %vm358_vm5, %v2687_v26, %v2677_v17 }
  0xa7   : > { %v3259_v31 = vpop.permute.xlu0 %2695  ;;  %v385_v32 = vsel %vm384_vm6, %v2692_v29, %v2682_v22 }
  0xa8   : > { %v2698_v35 = vunpack.i.h.bf16 %v3259_v31  ;;  %v2697_v36 = vunpack.i.l.bf16 %v3259_v31  ;;  %v3265_v38 = vpop.permute.xlu1 %2700  ;;  %v2464_v40 = vpack.c.bf16 %v385_v32, %v359_v30 }
  0xa9   : > { %v2703_v43 = vunpack.i.h.bf16 %v3265_v38  ;;  %v2702_v45 = vunpack.i.l.bf16 %v3265_v38 }
  0xaa   : > { %2465 = vmatpush1.bf16.msra.mxu0 %v2464_v40  ;;  %v486_v46 = vsel %vm274_vm2, %v2648_v34, %v2697_v36  ;;  %v277_v44 = vsel %vm274_vm2, %v2638_v37, %v2698_v35 }
  0xab   : > { %v3277_v49 = vpop.permute.xlu0 %2705  ;;  %v511_v47 = vsel %vm300_vm3, %v2653_v42, %v2702_v45  ;;  %v303_v50 = vsel %vm300_vm3, %v2643_v41, %v2703_v43 }
  0xac   : > { %v2708_v52 = vunpack.i.h.bf16 %v3277_v49  ;;  %v2707_v54 = vunpack.i.l.bf16 %v3277_v49  ;;  %v405_v56 = vpop.permute.xlu1 %404  ;;  %v2470_v33 = vpack.c.bf16 %v511_v47, %v486_v46  ;;  %v2472_v57 = vpack.c.bf16 %v303_v50, %v277_v44 }
  0xae   : > { %2471 = vmatprep.subr.bf16.mxu1 %v2470_v33  ;;  %v542_v37 = vsel %vm332_vm4, %v2663_v48, %v2707_v54  ;;  %v335_v55 = vsel %vm332_vm4, %v2658_v53, %v2708_v52 }
  0xaf   : > { %2473 = vmatpush1.bf16.msra.mxu1 %v2472_v57  ;;  %v3293_v39 = vpop.permute.xlu0 %406  ;;  %v2474_v41 = vpack.c.bf16 %v542_v37, %v3116_v7  ;;  %v2476_v58 = vpack.c.bf16 %v335_v55, %v3113_v6 }
  0xb0   : > { %v2711_v60 = vpop.permute.xlu1 %2710  ;;  %v412_v61 = vsel %vm410_vm7, %v405_v56, %v3293_v39 }
  0xb1   : > { %707 = vmatprep.subr.mxu0 %v412_v61  ;;  %2475 = vmatprep.subr.bf16.mxu1 %v2474_v41  ;;  %v2713_v62 = vunpack.i.h.bf16 %v2711_v60  ;;  %v2712_v63 = vunpack.i.l.bf16 %v2711_v60 }
  0xb3   : > { %2477 = vmatpush1.bf16.msra.mxu1 %v2476_v58  ;;  %v2716_v4 = vpop.permute.xlu0 %2715  ;;  %v437_v7 = vsel %vm222_vm0, %v2667_v2, %v2712_v63  ;;  %v438_v10 = vsel %vm222_vm0, %v2712_v63, %v2713_v62 }
  0xb4   : > { %v2718_v51 = vunpack.i.h.bf16 %v2716_v4  ;;  %v2717_v5 = vunpack.i.l.bf16 %v2716_v4  ;;  %v403_v53 = vpop.permute.xlu1 %402 }
  0xb5   : > { %v411_v6 = vsel %vm410_vm7, %v403_v53, %v405_v56  ;;  %v911_v53 = vlaneseq }
  0xb6   : > { %v462_v1 = vsel %vm248_vm1, %v2672_v9, %v2717_v5  ;;  %708 = vmatpush1.msra.mxu0 %v411_v6  ;;  %v463_v13 = vsel %vm248_vm1, %v2717_v5, %v2718_v51 }
  0xb7   : > { %v2484_v0 = vpack.c.bf16 %v462_v1, %v437_v7  ;;  %2432 = vmatmul.mubr.msk.f32.vlgmr.msra.gmra.mrb[0].mxu0 %vm687_vm8, %v3302_v8  ;;  %v2721_v17 = vpop.permute.xlu0 %2720  ;;  %v2482_v19 = vpack.c.bf16 %v463_v13, %v438_v10  ;;  %v912_v6 = vshrl.u32 %v911_v53, 7  ;;  %v205_v10 = vld [vmem:[%s3899_s3] sm:$0x3f] }
  0xb8   : > { %v2723_v59 = vunpack.i.h.bf16 %v2721_v17  ;;  %v2722_v22 = vunpack.i.l.bf16 %v2721_v17  ;;  %v2726_v2 = vpop.permute.xlu1 %2725  ;;  %897 = vmatprep.mubr.f32.mxu0 %v3051_v14 }
  0xb9   : > { %v2728_v9 = vunpack.i.h.bf16 %v2726_v2  ;;  %v2727_v23 = vunpack.i.l.bf16 %v2726_v2  ;;  %2483 = vmatprep.subr.bf16.mxu0 %v2482_v19  ;;  %v913_v7 = vsub.s32 0, %v912_v6 }
  0xba   : > { %2485 = vmatpush1.bf16.msra.mxu0 %v2484_v0  ;;  %v567_v25 = vsel %vm358_vm5, %v2688_v20, %v2722_v22  ;;  %v361_v26 = vsel %vm358_vm5, %v2678_v16, %v2723_v59 }
  0xbb   : > { %v2731_v28 = vpop.permute.xlu0 %2730  ;;  %v592_v24 = vsel %vm384_vm6, %v2693_v3, %v2727_v23  ;;  %v387_v29 = vsel %vm384_vm6, %v2683_v21, %v2728_v9  ;;  %v3364_v17 = vrot.slane %v205_v10, %v913_v7 }
  0xbc   : > { %v2733_v30 = vunpack.i.h.bf16 %v2731_v28  ;;  %v2732_v32 = vunpack.i.l.bf16 %v2731_v28  ;;  %v2736_v27 = vpop.permute.xlu1 %2735  ;;  %v2478_v34 = vpack.c.bf16 %v592_v24, %v567_v25  ;;  %v2480_v35 = vpack.c.bf16 %v387_v29, %v361_v26 }
  0xbd   : > { %v2738_v40 = vunpack.i.h.bf16 %v2736_v27  ;;  %v2737_v42 = vunpack.i.l.bf16 %v2736_v27  ;;  %v921_v25 = vsub.s32 2, %v912_v6  ;;  %v925_v26 = vsub.s32 3, %v912_v6 }
  0xbe   : > { %v487_v11 = vsel %vm274_vm2, %v2697_v36, %v2732_v32  ;;  %2479 = vmatprep.subr.bf16.mxu1 %v2478_v34  ;;  %v488_v16 = vsel %vm274_vm2, %v2732_v32, %v2733_v30 }
  0xbf   : > { %v512_v18 = vsel %vm300_vm3, %v2702_v45, %v2737_v42  ;;  %2481 = vmatpush1.bf16.msra.mxu1 %v2480_v35  ;;  %v2741_v21 = vpop.permute.xlu0 %2740  ;;  %v513_v43 = vsel %vm300_vm3, %v2737_v42, %v2738_v40  ;;  %v3380_v29 = vrot.slane %v205_v10, %v921_v25  ;;  %v3382_v27 = vrot.slane %v205_v10, %v925_v26 }
  0xc0   : > { %v2488_v46 = vpack.c.bf16 %v512_v18, %v487_v11  ;;  %v2743_v44 = vunpack.i.h.bf16 %v2741_v21  ;;  %v2742_v48 = vunpack.i.l.bf16 %v2741_v21  ;;  %v610_v47 = vpop.permute.xlu1 %609  ;;  %v2486_v50 = vpack.c.bf16 %v513_v43, %v488_v16 }
  0xc2   : > { %v543_v31 = vsel %vm332_vm4, %v2707_v54, %v2742_v48  ;;  %2487 = vmatprep.subr.bf16.mxu0 %v2486_v50  ;;  %v544_v36 = vsel %vm332_vm4, %v2742_v48, %v2743_v44  ;;  %v929_v44 = vsub.s32 4, %v912_v6 }
  0xc3   : > { %v2492_v38 = vpack.c.bf16 %v543_v31, %v3136_v12  ;;  %2489 = vmatpush1.bf16.msra.mxu0 %v2488_v46  ;;  %v612_v45 = vpop.permute.xlu0 %611  ;;  %v2490_v52 = vpack.c.bf16 %v544_v36, %v3143_v15  ;;  %v933_v31 = vsub.s32 5, %v912_v6 }
  0xc4   : > { %v409_v56 = vpop.permute.xlu1 %408  ;;  %v617_v33 = vsel %vm410_vm7, %v610_v47, %v612_v45  ;;  %v3407_v47 = vrot.slane %v205_v10, %v929_v44 }
  0xc5   : > { %778 = vmatprep.subr.mxu1 %v617_v33  ;;  %2491 = vmatprep.subr.bf16.mxu0 %v2490_v52  ;;  %v413_v57 = vsel %vm410_vm7, %v3293_v39, %v409_v56 }
  0xc6   : > { %779 = vmatpush1.msra.mxu1 %v413_v57 }
  0xc7   : > { %2493 = vmatpush1.bf16.msra.mxu0 %v2492_v38  ;;  %v2746_v49 = vpop.permute.xlu0 %2745  ;;  %2433 = vmatmul.mubr.msk.f32.vlgmr.msra.gmra.mrb[0].mxu1 %vm687_vm8, %v3302_v8 }
  0xc8   : > { %v2748_v54 = vunpack.i.h.bf16 %v2746_v49  ;;  %v2747_v12 = vunpack.i.l.bf16 %v2746_v49  ;;  %v2751_v37 = vpop.permute.xlu1 %2750  ;;  %1495 = vmatprep.mubr.f32.mxu1 %v3051_v14  ;;  %v2436_v49 = vld [vmem:[%s3898_s2 + $0x8] sm:$0xff] }
  0xc9   : > { %v2753_v15 = vunpack.i.h.bf16 %v2751_v37  ;;  %v2752_v55 = vunpack.i.l.bf16 %v2751_v37 }
  0xca   : > { %v568_v41 = vsel %vm358_vm5, %v2722_v22, %v2747_v12  ;;  %v569_v58 = vsel %vm358_vm5, %v2747_v12, %v2748_v54 }
  0xcb   : > { %v593_v60 = vsel %vm384_vm6, %v2727_v23, %v2752_v55  ;;  %v594_v39 = vsel %vm384_vm6, %v2752_v55, %v2753_v15  ;;  %v614_v62 = vpop.permute.xlu0 %613 }
  0xcc   : > { %v2496_v61 = vpack.c.bf16 %v593_v60, %v568_v41  ;;  %v2494_v63 = vpack.c.bf16 %v594_v39, %v569_v58  ;;  %v616_v4 = vpop.permute.xlu1 %615  ;;  %v618_v5 = vsel %vm410_vm7, %v612_v45, %v614_v62  ;;  %v3417_v45 = vrot.slane %v205_v10, %v933_v31 }
  0xcd   : > { %v619_v51 = vsel %vm410_vm7, %v614_v62, %v616_v4 }
  0xce   : > { %2495 = vmatprep.subr.bf16.mxu0 %v2494_v63 }
  0xcf   : > { %2497 = vmatpush1.bf16.msra.mxu0 %v2496_v61 }
  0xd0   : > { %849 = vmatprep.subr.mxu0 %v619_v51  ;;  %v2762_v54 = vpop.permute.xlu1 %2761 }
  0xd1   : > { %v2763_v39 = vunpack.i.l.bf16 %v2762_v54  ;;  %v2764_v31 = vunpack.i.h.bf16 %v2762_v54 }
  0xd3   : > { %850 = vmatpush1.msra.mxu0 %v618_v5 }
  0xd4   : > { %2434 = vmatmul.mubr.msk.f32.vlgmr.msra.gmra.mrb[2].mxu0 %vm687_vm8, %v3302_v8  ;;  %v917_v8 = vsub.s32 1, %v912_v6  ;;  %v3457_v12 = vpop.permute.xlu1 %2771 }
  0xd5   : > { %1566 = vmatprep.mubr.f32.mxu0 %v3051_v14 }
  0xd6   : > { %v3366_v59 = vrot.slane %v205_v10, %v917_v8 }
  0xdc   : > { %v685_v1 = vpop.permute.xlu0 %684 }
  0xe0   : > { %v3461_v15 = vpop.permute.xlu0 %2756 }
  0xe1   : > { %v2758_v60 = vunpack.i.l.bf16 %v3461_v15 }
  0xe4   : > { %v3466_v5 = vpop.permute.xlu0 %2766 }
 0x18a   : > { %v757_v13 = vpop.f32.mrb[0].mxu0 }
 0x18b   : > { %v758_v0 = vadd.f32 %v757_v13, %v685_v1  ;;  %v759_v19 = vpop.f32.mrb[1].mxu0 }
 0x18c   : > { %v760_v20 = vadd.f32 %v759_v19, %v685_v1 }
 0x18d   : > { %v904_v22 = vmax.f32 %v758_v0, 0.0 }
 0x18e   : > { %v905_v2 = vmax.f32 %v760_v20, 0.0 }
 0x18f   : > { %v3369_v3 = vmul.f32 %v3364_v17, %v904_v22  ;;  %v2773_v22 = vunpack.i.l.bf16 %v3457_v12 }
 0x190   : > { %v3372_v9 = vmul.f32 %v3366_v59, %v905_v2  ;;  %v2768_v2 = vunpack.i.l.bf16 %v3466_v5 }
 0x191   : > { %1142 = vrot.lane.b32.xlu1 %v3369_v3, %s3052_s29 }
 0x192   : > { %v2775_v23 = vpack.i.bf16 %v3372_v9, %v3369_v3 }
 0x195   : > { %2776 = vrot.lane.b32.xlu1 %v2775_v23, %s3044_s22 }
 0x199   : > { %2781 = vrot.lane.b32.xlu1 %v2775_v23, %s3045_s23 }
 0x19a   : > { %v828_v28 = vpop.f32.mrb[0].mxu1 }
 0x19b   : > { %v829_v24 = vadd.f32 %v828_v28, %v685_v1  ;;  %v830_v30 = vpop.f32.mrb[1].mxu1 }
 0x19c   : > { %v831_v32 = vadd.f32 %v830_v30, %v685_v1 }
 0x19d   : > { %v906_v34 = vmax.f32 %v829_v24, 0.0  ;;  %2791 = vrot.lane.b32.xlu1 %v2775_v23, %s3047_s25 }
 0x19e   : > { %v907_v35 = vmax.f32 %v831_v32, 0.0 }
 0x19f   : > { %v3386_v40 = vmul.f32 %v3380_v29, %v906_v34 }
 0x1a0   : > { %v3389_v42 = vmul.f32 %v3382_v27, %v907_v35 }
 0x1a1   : > { %1146 = vrot.lane.b32.xlu0 %v3386_v40, %s3052_s29  ;;  %v2795_v21 = vpack.i.bf16 %v3386_v40, %v3372_v9 }
 0x1a2   : > { %v2800_v11 = vpack.i.bf16 %v3389_v42, %v3369_v3  ;;  %v2810_v16 = vpack.i.bf16 %v3386_v40, %v3389_v42 }
 0x1a4   : > { %2801 = vrot.lane.b32.xlu1 %v2800_v11, %s3048_s26 }
 0x1a5   : > { %2786 = vrot.lane.b32.xlu0 %v2775_v23, %s3046_s24 }
 0x1a7   : > { %v899_v18 = vpop.f32.mrb[2].mxu0 }
 0x1a8   : > { %v901_v43 = vpop.f32.mrb[3].mxu0  ;;  %2811 = vrot.lane.b32.xlu1 %v2810_v16, %s3045_s23  ;;  %v900_v46 = vadd.f32 %v899_v18, %v685_v1 }
 0x1a9   : > { %2796 = vrot.lane.b32.xlu0 %v2795_v21, %s3048_s26  ;;  %v902_v50 = vadd.f32 %v901_v43, %v685_v1 }
 0x1aa   : > { %v908_v48 = vmax.f32 %v900_v46, 0.0 }
 0x1ab   : > { %v909_v38 = vmax.f32 %v902_v50, 0.0 }
 0x1ac   : > { %2821 = vrot.lane.b32.xlu1 %v2795_v21, %s3050_s28  ;;  %v3412_v36 = vmul.f32 %v3407_v47, %v908_v48 }
 0x1ad   : > { %2806 = vrot.lane.b32.xlu0 %v2810_v16, %s3044_s22  ;;  %v3425_v56 = vmul.f32 %v3417_v45, %v909_v38 }
 0x1ae   : > { %v2845_v52 = vpack.i.bf16 %v3051_v14, %v3412_v36 }
 0x1af   : > { %v2860_v33 = vpack.i.bf16 %v3425_v56, %v3412_v36  ;;  %v2890_v57 = vpack.i.bf16 %v3051_v14, %v3425_v56 }
 0x1b0   : > { %2831 = vrot.lane.b32.xlu1 %v2800_v11, %s3050_s28 }
 0x1b1   : > { %2816 = vrot.lane.b32.xlu0 %v2795_v21, %s3049_s27 }
 0x1b4   : > { %2841 = vrot.lane.b32.xlu1 %v2810_v16, %s3047_s25 }
 0x1b5   : > { %2826 = vrot.lane.b32.xlu0 %v2800_v11, %s3049_s27 }
 0x1b8   : > { %1144 = vrot.lane.b32.xlu1 %v3372_v9, %s3052_s29 }
 0x1b9   : > { %2836 = vrot.lane.b32.xlu0 %v2810_v16, %s3046_s24 }
 0x1bc   : > { %1348 = vrot.lane.b32.xlu1 %v3389_v42, %s3052_s29 }
 0x1bd   : > { %2846 = vrot.lane.b32.xlu0 %v2845_v52, %s3048_s26 }
 0x1c0   : > { %2856 = vrot.lane.b32.xlu1 %v2845_v52, %s3050_s28 }
 0x1c1   : > { %2851 = vrot.lane.b32.xlu0 %v2845_v52, %s3049_s27 }
 0x1c4   : > { %2861 = vrot.lane.b32.xlu1 %v2860_v33, %s3044_s22 }
 0x1c5   : > { %1350 = vrot.lane.b32.xlu0 %v3412_v36, %s3052_s29 }
 0x1c8   : > { %2876 = vrot.lane.b32.xlu1 %v2860_v33, %s3047_s25 }
 0x1c9   : > { %2866 = vrot.lane.b32.xlu0 %v2860_v33, %s3045_s23 }
 0x1cc   : > { %1148 = vrot.lane.b32.xlu1 %v3051_v14, %s3052_s29 }
 0x1cd   : > { %2871 = vrot.lane.b32.xlu0 %v2860_v33, %s3046_s24 }
 0x1d0   : > { %2891 = vrot.lane.b32.xlu1 %v2890_v57, %s3050_s28 }
 0x1d1   : > { %2881 = vrot.lane.b32.xlu0 %v2890_v57, %s3048_s26 }
 0x1d4   : > { %1354 = vrot.lane.b32.xlu1 %v3051_v14, %s3052_s29 }
 0x1d5   : > { %2886 = vrot.lane.b32.xlu0 %v2890_v57, %s3049_s27  ;;  %v2759_v57 = vunpack.i.h.bf16 %v3461_v15 }
 0x1d8   : > { %2896 = vrot.lane.b32.xlu1 %v3051_v14, %s3044_s22 }
 0x1d9   : > { %1352 = vrot.lane.b32.xlu0 %v3425_v56, %s3052_s29 }
 0x1dc   : > { %2906 = vrot.lane.b32.xlu1 %v3051_v14, %s3046_s24 }
 0x1dd   : > { %1425 = vperm.xlu0 %2754, %v2436_v49  }
 0x1e0   : > { %2916 = vrot.lane.b32.xlu1 %v3051_v14, %s3048_s26 }
 0x1e1   : > { %2901 = vrot.lane.b32.xlu0 %v3051_v14, %s3045_s23 }
 0x1e5   : > { %2911 = vrot.lane.b32.xlu0 %v3051_v14, %s3047_s25 }
 0x203   : > { %v3459_v37 = vpop.permute.xlu1 %1142 }
 0x207   : > { %v2777_v55 = vpop.permute.xlu1 %2776 }
 0x208   : > { %v2779_v41 = vunpack.i.h.bf16 %v2777_v55  ;;  %v2778_v58 = vunpack.i.l.bf16 %v2777_v55 }
 0x20a   : > { %v969_v62 = vsel %vm222_vm0, %v2758_v60, %v2778_v58  ;;  %v970_v51 = vsel %vm222_vm0, %v2778_v58, %v2779_v41 }
 0x20b   : > { %v2782_v61 = vpop.permute.xlu1 %2781 }
 0x20c   : > { %v2784_v63 = vunpack.i.h.bf16 %v2782_v61  ;;  %v2783_v4 = vunpack.i.l.bf16 %v2782_v61 }
 0x20e   : > { %v994_v53 = vsel %vm248_vm1, %v2763_v39, %v2783_v4  ;;  %v995_v6 = vsel %vm248_vm1, %v2783_v4, %v2784_v63 }
 0x20f   : > { %v2500_v7 = vpack.c.bf16 %v994_v53, %v969_v62  ;;  %v2498_v1 = vpack.c.bf16 %v995_v6, %v970_v51  ;;  %v3470_v10 = vpop.permute.xlu1 %2791 }
 0x210   : > { %v2794_v13 = vunpack.i.h.bf16 %v3470_v10  ;;  %v2793_v0 = vunpack.i.l.bf16 %v3470_v10 }
 0x211   : > { %2499 = vmatprep.subr.bf16.mxu1 %v2498_v1 }
 0x212   : > { %2501 = vmatpush1.bf16.msra.mxu1 %v2500_v7  ;;  %v1044_v26 = vsel %vm300_vm3, %v2773_v22, %v2793_v0  ;;  %v1045_v32 = vsel %vm300_vm3, %v2793_v0, %v2794_v13 }
 0x213   : > { %v3472_v8 = vpop.permute.xlu0 %1146 }
 0x216   : > { %v3476_v19 = vpop.permute.xlu1 %2801 }
 0x217   : > { %v3478_v20 = vpop.permute.xlu0 %2786  ;;  %v2803_v16 = vunpack.i.l.bf16 %v3476_v19 }
 0x218   : > { %v2789_v23 = vunpack.i.h.bf16 %v3478_v20  ;;  %v2788_v25 = vunpack.i.l.bf16 %v3478_v20  ;;  %v2804_v20 = vunpack.i.h.bf16 %v3476_v19 }
 0x21a   : > { %v1019_v28 = vsel %vm274_vm2, %v2768_v2, %v2788_v25  ;;  %v3486_v24 = vpop.permute.xlu1 %2811  ;;  %v1020_v30 = vsel %vm274_vm2, %v2788_v25, %v2789_v23 }
 0x21b   : > { %v2504_v34 = vpack.c.bf16 %v1044_v26, %v1019_v28  ;;  %v3494_v35 = vpop.permute.xlu0 %2796  ;;  %v2502_v11 = vpack.c.bf16 %v1045_v32, %v1020_v30  ;;  %v2814_v43 = vunpack.i.h.bf16 %v3486_v24  ;;  %v2813_v46 = vunpack.i.l.bf16 %v3486_v24 }
 0x21c   : > { %v2799_v18 = vunpack.i.h.bf16 %v3494_v35  ;;  %v2798_v21 = vunpack.i.l.bf16 %v3494_v35 }
 0x21d   : > { %2503 = vmatprep.subr.bf16.mxu1 %v2502_v11  ;;  %v996_v58 = vsel %vm248_vm1, %v2784_v63, %v2814_v43  ;;  %v1200_v60 = vsel %vm248_vm1, %v2764_v31, %v2813_v46  ;;  %v2774_v11 = vunpack.i.h.bf16 %v3457_v12 }
 0x21e   : > { %v1075_v44 = vsel %vm332_vm4, %v2803_v16, %v2798_v21  ;;  %v3502_v48 = vpop.permute.xlu1 %2821  ;;  %2505 = vmatpush1.bf16.msra.mxu1 %v2504_v34  ;;  %v1076_v50 = vsel %vm332_vm4, %v2798_v21, %v2799_v18  ;;  %v2769_v16 = vunpack.i.h.bf16 %v3466_v5 }
 0x21f   : > { %v2508_v38 = vpack.c.bf16 %v1075_v44, %v3369_v3  ;;  %v3508_v52 = vpop.permute.xlu0 %2806  ;;  %v2506_v33 = vpack.c.bf16 %v1076_v50, %v3372_v9  ;;  %v2824_v54 = vunpack.i.h.bf16 %v3502_v48  ;;  %v2823_v3 = vunpack.i.l.bf16 %v3502_v48 }
 0x220   : > { %v2809_v49 = vunpack.i.h.bf16 %v3508_v52  ;;  %v2808_v55 = vunpack.i.l.bf16 %v3508_v52 }
 0x221   : > { %2507 = vmatprep.subr.bf16.mxu1 %v2506_v33  ;;  %v1126_v7 = vsel %vm384_vm6, %v2823_v3, %v2824_v54 }
 0x222   : > { %v971_v39 = vsel %vm222_vm0, %v2779_v41, %v2809_v49  ;;  %v3521_v9 = vpop.permute.xlu1 %2831  ;;  %2509 = vmatpush1.bf16.msra.mxu1 %v2508_v38  ;;  %v1175_v15 = vsel %vm222_vm0, %v2759_v57, %v2808_v55 }
 0x223   : > { %v2516_v61 = vpack.c.bf16 %v996_v58, %v971_v39  ;;  %v3526_v62 = vpop.permute.xlu0 %2816  ;;  %v2514_v63 = vpack.c.bf16 %v1200_v60, %v1175_v15  ;;  %v2833_v53 = vunpack.i.l.bf16 %v3521_v9  ;;  %v2834_v60 = vunpack.i.h.bf16 %v3521_v9 }
 0x224   : > { %v2819_v4 = vunpack.i.h.bf16 %v3526_v62  ;;  %v2818_v51 = vunpack.i.l.bf16 %v3526_v62 }
 0x225   : > { %2515 = vmatprep.subr.bf16.mxu0 %v2514_v63  ;;  %v1125_v2 = vsel %vm384_vm6, %v2833_v53, %v2823_v3 }
 0x226   : > { %v3531_v6 = vpop.permute.xlu1 %2841  ;;  %2517 = vmatpush1.bf16.msra.mxu0 %v2516_v61  ;;  %v1101_v41 = vsel %vm358_vm5, %v2818_v51, %v2819_v4 }
 0x227   : > { %v2827_v1 = vpop.permute.xlu0 %2826  ;;  %v2510_v0 = vpack.c.bf16 %v1126_v7, %v1101_v41  ;;  %v2844_v25 = vunpack.i.h.bf16 %v3531_v6  ;;  %v2843_v26 = vunpack.i.l.bf16 %v3531_v6 }
 0x228   : > { %v2828_v22 = vunpack.i.l.bf16 %v2827_v1 }
 0x229   : > { %2511 = vmatprep.subr.bf16.mxu1 %v2510_v0  ;;  %v1046_v50 = vsel %vm300_vm3, %v2794_v13, %v2844_v25  ;;  %v1250_v5 = vsel %vm300_vm3, %v2774_v11, %v2843_v26  ;;  %v3566_v13 = vld [vmem:[%s3897_s1 + $0x8] sm:$0xff] }
 0x22a   : > { %v1100_v28 = vsel %vm358_vm5, %v2828_v22, %v2818_v51  ;;  %v1145_v30 = vpop.permute.xlu1 %1144 }
 0x22b   : > { %v2512_v32 = vpack.c.bf16 %v1125_v2, %v1100_v28  ;;  %v3541_v34 = vpop.permute.xlu0 %2836  ;;  %v1151_v44 = vsel %vm410_vm7, %v1145_v30, %v3472_v8 }
 0x22c   : > { %v2839_v21 = vunpack.i.h.bf16 %v3541_v34  ;;  %v2838_v43 = vunpack.i.l.bf16 %v3541_v34 }
 0x22d   : > { %2513 = vmatpush1.bf16.msra.mxu1 %v2512_v32 }
 0x22e   : > { %v1021_v31 = vsel %vm274_vm2, %v2789_v23, %v2839_v21  ;;  %v1349_v38 = vpop.permute.xlu1 %1348  ;;  %1447 = vmatprep.subr.mxu1 %v1151_v44  ;;  %v1225_v12 = vsel %vm274_vm2, %v2769_v16, %v2838_v43  ;;  %v1150_v23 = vsel %vm410_vm7, %v3459_v37, %v1145_v30 }
 0x22f   : > { %v2520_v33 = vpack.c.bf16 %v1046_v50, %v1021_v31  ;;  %v3561_v57 = vpop.permute.xlu0 %2846  ;;  %v2518_v10 = vpack.c.bf16 %v1250_v5, %v1225_v12 }
 0x230   : > { %v2849_v49 = vunpack.i.h.bf16 %v3561_v57  ;;  %v2848_v58 = vunpack.i.l.bf16 %v3561_v57 }
 0x231   : > { %1448 = vmatpush1.msra.mxu1 %v1150_v23  ;;  %2519 = vmatprep.subr.bf16.mxu0 %v2518_v10 }
 0x232   : > { %v1077_v3 = vsel %vm332_vm4, %v2799_v18, %v2849_v49  ;;  %v3577_v39 = vpop.permute.xlu1 %2856  ;;  %2437 = vmatmul.mubr.msk.f32.vlgmr.msra.gmra.mrb[2].mxu1 %vm687_vm8, %v3566_v13  ;;  %2521 = vmatpush1.bf16.msra.mxu0 %v2520_v33  ;;  %v1281_v37 = vsel %vm332_vm4, %v2804_v20, %v2848_v58  ;;  %v2829_v18 = vunpack.i.h.bf16 %v2827_v1 }
 0x233   : > { %v2524_v19 = vpack.c.bf16 %v1077_v3, %v3386_v40  ;;  %v2859_v15 = vunpack.i.h.bf16 %v3577_v39  ;;  %v2858_v9 = vunpack.i.l.bf16 %v3577_v39  ;;  %v3587_v61 = vpop.permute.xlu0 %2851  ;;  %v2522_v35 = vpack.c.bf16 %v1281_v37, %v3389_v42  ;;  %1637 = vmatprep.mubr.f32.mxu1 %v3051_v14 }
 0x234   : > { %v2854_v62 = vunpack.i.h.bf16 %v3587_v61  ;;  %v2853_v63 = vunpack.i.l.bf16 %v3587_v61 }
 0x235   : > { %v1127_v51 = vsel %vm384_vm6, %v2824_v54, %v2859_v15  ;;  %2523 = vmatprep.subr.bf16.mxu0 %v2522_v35  ;;  %v1331_v40 = vsel %vm384_vm6, %v2834_v60, %v2858_v9 }
 0x236   : > { %v1102_v53 = vsel %vm358_vm5, %v2819_v4, %v2854_v62  ;;  %v2862_v41 = vpop.permute.xlu1 %2861  ;;  %2525 = vmatpush1.bf16.msra.mxu0 %v2524_v19  ;;  %v1306_v42 = vsel %vm358_vm5, %v2829_v18, %v2853_v63 }
 0x237   : > { %v2528_v7 = vpack.c.bf16 %v1127_v51, %v1102_v53  ;;  %v3603_v1 = vpop.permute.xlu0 %1350  ;;  %v2526_v0 = vpack.c.bf16 %v1331_v40, %v1306_v42  ;;  %v2863_v48 = vunpack.i.l.bf16 %v2862_v41  ;;  %v2864_v54 = vunpack.i.h.bf16 %v2862_v41 }
 0x238   : > { %v1356_v2 = vsel %vm410_vm7, %v1349_v38, %v3603_v1 }
 0x239   : > { %2527 = vmatprep.subr.bf16.mxu0 %v2526_v0  ;;  %v1176_v30 = vsel %vm222_vm0, %v2808_v55, %v2863_v48  ;;  %v1177_v44 = vsel %vm222_vm0, %v2863_v48, %v2864_v54 }
 0x23a   : > { %v2877_v22 = vpop.permute.xlu1 %2876  ;;  %2529 = vmatpush1.bf16.msra.mxu0 %v2528_v7 }
 0x23b   : > { %v2867_v25 = vpop.permute.xlu0 %2866  ;;  %1518 = vmatprep.subr.mxu0 %v1356_v2  ;;  %v2878_v32 = vunpack.i.l.bf16 %v2877_v22  ;;  %v2879_v11 = vunpack.i.h.bf16 %v2877_v22 }
 0x23c   : > { %v2869_v4 = vunpack.i.h.bf16 %v2867_v25  ;;  %v2868_v28 = vunpack.i.l.bf16 %v2867_v25 }
 0x23d   : > { %v1251_v24 = vsel %vm300_vm3, %v2843_v26, %v2878_v32  ;;  %v1252_v55 = vsel %vm300_vm3, %v2878_v32, %v2879_v11 }
 0x23e   : > { %v1201_v16 = vsel %vm248_vm1, %v2813_v46, %v2868_v28  ;;  %v1149_v21 = vpop.permute.xlu1 %1148  ;;  %v1202_v50 = vsel %vm248_vm1, %v2868_v28, %v2869_v4 }
 0x23f   : > { %v2532_v31 = vpack.c.bf16 %v1201_v16, %v1176_v30  ;;  %v1152_v38 = vsel %vm410_vm7, %v3472_v8, %v1149_v21  ;;  %v2872_v12 = vpop.permute.xlu0 %2871  ;;  %v2530_v5 = vpack.c.bf16 %v1202_v50, %v1177_v44 }
 0x240   : > { %v2874_v52 = vunpack.i.h.bf16 %v2872_v12  ;;  %v2873_v33 = vunpack.i.l.bf16 %v2872_v12  ;;  %1519 = vmatpush1.msra.mxu0 %v1152_v38 }
 0x241   : > { %2438 = vmatmul.mubr.msk.f32.vlgmr.msra.gmra.mrb[4].mxu0 %vm687_vm8, %v3566_v13  ;;  %2531 = vmatprep.subr.bf16.mxu1 %v2530_v5 }
 0x242   : > { %v1226_v46 = vsel %vm274_vm2, %v2838_v43, %v2873_v33  ;;  %2533 = vmatpush1.bf16.msra.mxu1 %v2532_v31  ;;  %v1227_v8 = vsel %vm274_vm2, %v2873_v33, %v2874_v52  ;;  %2204 = vmatprep.mubr.f32.mxu0 %v3051_v14  ;;  %v2892_v20 = vpop.permute.xlu1 %2891  ;;  %v2441_v52 = vld [vmem:[%s3898_s2 + $0x10] sm:$0xff] }
 0x243   : > { %v2536_v10 = vpack.c.bf16 %v1251_v24, %v1226_v46  ;;  %v2882_v6 = vpop.permute.xlu0 %2881  ;;  %v2534_v23 = vpack.c.bf16 %v1252_v55, %v1227_v8  ;;  %v2894_v60 = vunpack.i.h.bf16 %v2892_v20  ;;  %v2893_v3 = vunpack.i.l.bf16 %v2892_v20 }
 0x244   : > { %v2884_v26 = vunpack.i.h.bf16 %v2882_v6  ;;  %v2883_v49 = vunpack.i.l.bf16 %v2882_v6 }
 0x245   : > { %2535 = vmatprep.subr.bf16.mxu1 %v2534_v23  ;;  %v1332_v62 = vsel %vm384_vm6, %v2858_v9, %v2893_v3  ;;  %v1333_v51 = vsel %vm384_vm6, %v2893_v3, %v2894_v60 }
 0x246   : > { %v1282_v34 = vsel %vm332_vm4, %v2848_v58, %v2883_v49  ;;  %2537 = vmatpush1.bf16.msra.mxu1 %v2536_v10  ;;  %v1283_v43 = vsel %vm332_vm4, %v2883_v49, %v2884_v26  ;;  %v1355_v53 = vpop.permute.xlu1 %1354 }
 0x247   : > { %v2540_v37 = vpack.c.bf16 %v1282_v34, %v3412_v36  ;;  %v2887_v19 = vpop.permute.xlu0 %2886  ;;  %v2538_v15 = vpack.c.bf16 %v1283_v43, %v3425_v56 }
 0x248   : > { %v2889_v35 = vunpack.i.h.bf16 %v2887_v19  ;;  %v2888_v18 = vunpack.i.l.bf16 %v2887_v19 }
 0x249   : > { %2539 = vmatprep.subr.bf16.mxu1 %v2538_v15 }
 0x24a   : > { %v1307_v57 = vsel %vm358_vm5, %v2853_v63, %v2888_v18  ;;  %2541 = vmatpush1.bf16.msra.mxu1 %v2540_v37  ;;  %v1308_v58 = vsel %vm358_vm5, %v2888_v18, %v2889_v35  ;;  %v3728_v33 = vpop.permute.xlu1 %2896 }
 0x24b   : > { %v2544_v36 = vpack.c.bf16 %v1332_v62, %v1307_v57  ;;  %v1353_v40 = vpop.permute.xlu0 %1352  ;;  %v2542_v56 = vpack.c.bf16 %v1333_v51, %v1308_v58  ;;  %v2898_v6 = vunpack.i.l.bf16 %v3728_v33 }
 0x24c   : > { %v1358_v41 = vsel %vm410_vm7, %v1353_v40, %v1355_v53  ;;  %v1357_v39 = vsel %vm410_vm7, %v3603_v1, %v1353_v40 }
 0x24d   : > { %2543 = vmatprep.subr.bf16.mxu1 %v2542_v56 }
 0x24e   : > { %2545 = vmatpush1.bf16.msra.mxu1 %v2544_v36  ;;  %v3732_v46 = vpop.permute.xlu1 %2906 }
 0x24f   : > { %1589 = vmatprep.subr.mxu1 %v1358_v41  ;;  %v2908_v37 = vunpack.i.l.bf16 %v3732_v46 }
 0x252   : > { %1590 = vmatpush1.msra.mxu1 %v1357_v39  ;;  %v3736_v55 = vpop.permute.xlu1 %2916 }
 0x253   : > { %2439 = vmatmul.mubr.msk.f32.vlgmr.msra.gmra.mrb[4].mxu1 %vm687_vm8, %v3566_v13 }
 0x254   : > { %2275 = vmatprep.mubr.f32.mxu1 %v3051_v14 }
 0x25c   : > { %v1426_v9 = vpop.permute.xlu0 %1425 }
 0x260   : > { %v3730_v24 = vpop.permute.xlu0 %2901 }
 0x261   : > { %v2903_v23 = vunpack.i.l.bf16 %v3730_v24 }
 0x264   : > { %v3734_v8 = vpop.permute.xlu0 %2911 }
 0x265   : > { %v2913_v19 = vunpack.i.l.bf16 %v3734_v8 }
 0x305   : > { %v1497_v61 = vpop.f32.mrb[2].mxu1 }
 0x306   : > { %v1498_v63 = vadd.f32 %v1497_v61, %v1426_v9  ;;  %v1499_v42 = vpop.f32.mrb[3].mxu1 }
 0x307   : > { %v1500_v7 = vadd.f32 %v1499_v42, %v1426_v9 }
 0x308   : > { %v1644_v0 = vmax.f32 %v1498_v63, 0.0 }
 0x309   : > { %v1645_v48 = vmax.f32 %v1500_v7, 0.0 }
 0x30a   : > { %v3653_v1 = vmul.f32 %v1644_v0, %v3364_v17 }
 0x30b   : > { %v3656_v13 = vmul.f32 %v1645_v48, %v3366_v59 }
 0x30c   : > { %1851 = vrot.lane.b32.xlu1 %v3653_v1, %s3052_s29  ;;  %1826 = vrot.lane.b32.xlu0 %v3653_v1, %s3050_s28 }
 0x30d   : > { %v2920_v54 = vpack.i.bf16 %v3656_v13, %v3653_v1 }
 0x310   : > { %2921 = vrot.lane.b32.xlu1 %v2920_v54, %s3044_s22  ;;  %2926 = vrot.lane.b32.xlu0 %v2920_v54, %s3045_s23 }
 0x314   : > { %v1568_v22 = vpop.f32.mrb[4].mxu0  ;;  %2931 = vrot.lane.b32.xlu1 %v2920_v54, %s3046_s24  ;;  %2936 = vrot.lane.b32.xlu0 %v2920_v54, %s3047_s25 }
 0x315   : > { %v1569_v17 = vadd.f32 %v1568_v22, %v1426_v9  ;;  %v1570_v59 = vpop.f32.mrb[5].mxu0 }
 0x316   : > { %v1571_v25 = vadd.f32 %v1570_v59, %v1426_v9 }
 0x317   : > { %v1646_v2 = vmax.f32 %v1569_v17, 0.0 }
 0x318   : > { %1853 = vrot.lane.b32.xlu1 %v3656_v13, %s3052_s29  ;;  %v1647_v28 = vmax.f32 %v1571_v25, 0.0 }
 0x319   : > { %v3671_v4 = vmul.f32 %v1646_v2, %v3380_v29 }
 0x31a   : > { %v3678_v32 = vmul.f32 %v1647_v28, %v3382_v27 }
 0x31b   : > { %v2940_v30 = vpack.i.bf16 %v3671_v4, %v3656_v13 }
 0x31c   : > { %v2960_v29 = vpack.i.bf16 %v3678_v32, %v3653_v1 }
 0x31d   : > { %2941 = vrot.lane.b32.xlu1 %v2940_v30, %s3048_s26  ;;  %2951 = vrot.lane.b32.xlu0 %v2940_v30, %s3050_s28 }
 0x321   : > { %2946 = vrot.lane.b32.xlu1 %v2940_v30, %s3049_s27  ;;  %1855 = vrot.lane.b32.xlu0 %v3671_v4, %s3052_s29 }
 0x325   : > { %2961 = vrot.lane.b32.xlu1 %v2960_v29, %s3049_s27  ;;  %2956 = vrot.lane.b32.xlu0 %v2960_v29, %s3048_s26 }
 0x326   : > { %v1639_v11 = vpop.f32.mrb[4].mxu1 }
 0x327   : > { %v1640_v16 = vadd.f32 %v1639_v11, %v1426_v9  ;;  %v1641_v21 = vpop.f32.mrb[5].mxu1 }
 0x328   : > { %v1642_v50 = vadd.f32 %v1641_v21, %v1426_v9 }
 0x329   : > { %v1648_v44 = vmax.f32 %v1640_v16, 0.0 }
 0x32a   : > { %v1649_v31 = vmax.f32 %v1642_v50, 0.0 }
 0x32b   : > { %v3688_v27 = vmul.f32 %v1648_v44, %v3407_v47 }
 0x32c   : > { %v3695_v12 = vmul.f32 %v1649_v31, %v3417_v45 }
 0x32d   : > { %v2965_v38 = vpack.i.bf16 %v3688_v27, %v3678_v32 }
 0x32e   : > { %v2995_v5 = vpack.i.bf16 %v3671_v4, %v3695_v12  ;;  %v3025_v47 = vpack.i.bf16 %v3051_v14, %v3695_v12  ;;  %v3015_v45 = vpack.i.bf16 %v3695_v12, %v3688_v27 }
 0x32f   : > { %2966 = vrot.lane.b32.xlu1 %v2965_v38, %s3044_s22  ;;  %2976 = vrot.lane.b32.xlu0 %v2965_v38, %s3046_s24 }
 0x333   : > { %2971 = vrot.lane.b32.xlu1 %v2965_v38, %s3045_s23  ;;  %2981 = vrot.lane.b32.xlu0 %v2965_v38, %s3047_s25 }
 0x337   : > { %2996 = vrot.lane.b32.xlu1 %v2995_v5, %s3046_s24  ;;  %2986 = vrot.lane.b32.xlu0 %v2995_v5, %s3044_s22  ;;  %s199_s24 = scalar_lea.vmem %s3900_s4, %s2595_s21 }
 0x33b   : > { %3001 = vrot.lane.b32.xlu1 %v2995_v5, %s3047_s25  ;;  %2991 = vrot.lane.b32.xlu0 %v2995_v5, %s3045_s23 }
 0x33f   : > { %3006 = vrot.lane.b32.xlu1 %v3051_v14, %s3049_s27  ;;  %3011 = vrot.lane.b32.xlu0 %v2965_v38, %s3050_s28 }
 0x343   : > { %3026 = vrot.lane.b32.xlu1 %v3025_v47, %s3050_s28  ;;  %1832 = vrot.lane.b32.xlu0 %v3051_v14, %s3050_s28 }
 0x347   : > { %2057 = vrot.lane.b32.xlu1 %v3678_v32, %s3052_s29  ;;  %3016 = vrot.lane.b32.xlu0 %v3015_v45, %s3048_s26 }
 0x34b   : > { %2061 = vrot.lane.b32.xlu1 %v3695_v12, %s3052_s29  ;;  %3021 = vrot.lane.b32.xlu0 %v3015_v45, %s3049_s27 }
 0x34f   : > { %2059 = vrot.lane.b32.xlu0 %v3688_v27, %s3052_s29  ;;  %2134 = vperm.xlu1 %3035, %v2441_v52  }
 0x353   : > { %3031 = vrot.lane.b32.xlu0 %v3051_v14, %s3052_s29 }
 0x37e   : > { %v3738_v10 = vpop.permute.xlu1 %1851  ;;  %v1827_v20 = vpop.permute.xlu0 %1826 }
 0x382   : > { %v3742_v26 = vpop.permute.xlu1 %2921  ;;  %v3744_v49 = vpop.permute.xlu0 %2926 }
 0x383   : > { %v2924_v60 = vunpack.i.h.bf16 %v3742_v26  ;;  %v2923_v3 = vunpack.i.l.bf16 %v3742_v26  ;;  %v2929_v34 = vunpack.i.h.bf16 %v3744_v49  ;;  %v2928_v43 = vunpack.i.l.bf16 %v3744_v49 }
 0x385   : > { %v1678_v15 = vsel %vm222_vm0, %v2898_v6, %v2923_v3  ;;  %v1703_v35 = vsel %vm248_vm1, %v2903_v23, %v2928_v43  ;;  %v1679_v18 = vsel %vm222_vm0, %v2923_v3, %v2924_v60  ;;  %v1704_v62 = vsel %vm248_vm1, %v2928_v43, %v2929_v34 }
 0x386   : > { %v2548_v57 = vpack.c.bf16 %v1703_v35, %v1678_v15  ;;  %v3760_v58 = vpop.permute.xlu1 %2931  ;;  %v3762_v51 = vpop.permute.xlu0 %2936  ;;  %v2546_v36 = vpack.c.bf16 %v1704_v62, %v1679_v18  ;;  %v2899_v18 = vunpack.i.h.bf16 %v3728_v33  ;;  %v2904_v62 = vunpack.i.h.bf16 %v3730_v24 }
 0x387   : > { %v2934_v40 = vunpack.i.h.bf16 %v3760_v58  ;;  %v2933_v53 = vunpack.i.l.bf16 %v3760_v58  ;;  %v2939_v56 = vunpack.i.h.bf16 %v3762_v51  ;;  %v2938_v41 = vunpack.i.l.bf16 %v3762_v51 }
 0x388   : > { %2547 = vmatprep.subr.bf16.mxu0 %v2546_v36  ;;  %v2909_v33 = vunpack.i.h.bf16 %v3732_v46  ;;  %v2914_v24 = vunpack.i.h.bf16 %v3734_v8  ;;  %v2918_v58 = vunpack.i.l.bf16 %v3736_v55 }
 0x389   : > { %v1728_v39 = vsel %vm274_vm2, %v2908_v37, %v2933_v53  ;;  %v1753_v9 = vsel %vm300_vm3, %v2913_v19, %v2938_v41  ;;  %2549 = vmatpush1.bf16.msra.mxu0 %v2548_v57  ;;  %v1729_v61 = vsel %vm274_vm2, %v2933_v53, %v2934_v40  ;;  %v1754_v63 = vsel %vm300_vm3, %v2938_v41, %v2939_v56 }
 0x38a   : > { %v2552_v42 = vpack.c.bf16 %v1753_v9, %v1728_v39  ;;  %v1854_v7 = vpop.permute.xlu1 %1853  ;;  %v2550_v0 = vpack.c.bf16 %v1754_v63, %v1729_v61 }
 0x38b   : > { %v1859_v19 = vsel %vm410_vm7, %v3738_v10, %v1854_v7 }
 0x38c   : > { %2551 = vmatprep.subr.bf16.mxu0 %v2550_v0 }
 0x38d   : > { %2553 = vmatpush1.bf16.msra.mxu0 %v2552_v42 }
 0x38f   : > { %v3776_v48 = vpop.permute.xlu1 %2941  ;;  %v3778_v54 = vpop.permute.xlu0 %2951 }
 0x390   : > { %v2944_v22 = vunpack.i.h.bf16 %v3776_v48  ;;  %v2943_v17 = vunpack.i.l.bf16 %v3776_v48  ;;  %v2954_v11 = vunpack.i.h.bf16 %v3778_v54  ;;  %v2953_v16 = vunpack.i.l.bf16 %v3778_v54 }
 0x392   : > { %v1785_v59 = vsel %vm332_vm4, %v2943_v17, %v2944_v22  ;;  %v1835_v47 = vsel %vm384_vm6, %v2953_v16, %v2954_v11  ;;  %v1834_v6 = vsel %vm384_vm6, %v1827_v20, %v2953_v16 }
 0x393   : > { %v3785_v2 = vpop.permute.xlu1 %2946  ;;  %v3787_v25 = vpop.permute.xlu0 %1855  ;;  %v2554_v28 = vpack.c.bf16 %v1785_v59, %v3656_v13 }
 0x394   : > { %v2949_v30 = vunpack.i.h.bf16 %v3785_v2  ;;  %v2948_v29 = vunpack.i.l.bf16 %v3785_v2  ;;  %v1860_v37 = vsel %vm410_vm7, %v1854_v7, %v3787_v25 }
 0x395   : > { %2555 = vmatprep.subr.bf16.mxu0 %v2554_v28 }
 0x396   : > { %v1810_v13 = vsel %vm358_vm5, %v2948_v29, %v2949_v30 }
 0x397   : > { %v3794_v21 = vpop.permute.xlu1 %2961  ;;  %v3796_v44 = vpop.permute.xlu0 %2956  ;;  %v2558_v52 = vpack.c.bf16 %v1835_v47, %v1810_v13 }
 0x398   : > { %v2963_v50 = vunpack.i.l.bf16 %v3794_v21  ;;  %v2958_v31 = vunpack.i.l.bf16 %v3796_v44 }
 0x39a   : > { %v1784_v38 = vsel %vm332_vm4, %v2958_v31, %v2943_v17  ;;  %v1809_v45 = vsel %vm358_vm5, %v2963_v50, %v2948_v29 }
 0x39b   : > { %v2556_v5 = vpack.c.bf16 %v1784_v38, %v3653_v1  ;;  %v2560_v23 = vpack.c.bf16 %v1834_v6, %v1809_v45  ;;  %v3817_v1 = vld [vmem:[%s3897_s1 + $0x10] sm:$0xff] }
 0x39d   : > { %2557 = vmatpush1.bf16.msra.mxu0 %v2556_v5 }
 0x39e   : > { %2559 = vmatprep.subr.bf16.mxu0 %v2558_v52 }
 0x3a1   : > { %v2967_v3 = vpop.permute.xlu1 %2966  ;;  %v3810_v43 = vpop.permute.xlu0 %2976  ;;  %2561 = vmatpush1.bf16.msra.mxu0 %v2560_v23 }
 0x3a2   : > { %2156 = vmatprep.subr.mxu0 %v1860_v37  ;;  %v2968_v15 = vunpack.i.l.bf16 %v2967_v3  ;;  %v2969_v42 = vunpack.i.h.bf16 %v2967_v3  ;;  %v2979_v0 = vunpack.i.h.bf16 %v3810_v43 }
 0x3a4   : > { %v1884_v36 = vsel %vm222_vm0, %v2899_v18, %v2968_v15  ;;  %v1885_v23 = vsel %vm222_vm0, %v2968_v15, %v2969_v42 }
 0x3a5   : > { %v2972_v20 = vpop.permute.xlu1 %2971  ;;  %v2982_v35 = vpop.permute.xlu0 %2981  ;;  %2157 = vmatpush1.msra.mxu0 %v1859_v19 }
 0x3a6   : > { %v2973_v57 = vunpack.i.l.bf16 %v2972_v20  ;;  %2442 = vmatmul.mubr.msk.f32.vlgmr.msra.gmra.mrb[6].mxu0 %vm687_vm8, %v3817_v1  ;;  %v2974_v9 = vunpack.i.h.bf16 %v2972_v20  ;;  %v2983_v61 = vunpack.i.l.bf16 %v2982_v35  ;;  %v2984_v17 = vunpack.i.h.bf16 %v2982_v35 }
 0x3a7   : > { %2346 = vmatprep.mubr.f32.mxu0 %v3051_v14  ;;  %v2978_v14 = vunpack.i.l.bf16 %v3810_v43 }
 0x3a8   : > { %v1909_v53 = vsel %vm248_vm1, %v2904_v62, %v2973_v57  ;;  %v1910_v38 = vsel %vm248_vm1, %v2973_v57, %v2974_v9  ;;  %v1959_v8 = vsel %vm300_vm3, %v2914_v24, %v2983_v61  ;;  %v1960_v35 = vsel %vm300_vm3, %v2983_v61, %v2984_v17 }
 0x3a9   : > { %v2997_v41 = vpop.permute.xlu1 %2996  ;;  %v2987_v10 = vpop.permute.xlu0 %2986  ;;  %v2562_v39 = vpack.c.bf16 %v1909_v53, %v1884_v36  ;;  %v1934_v26 = vsel %vm274_vm2, %v2909_v33, %v2978_v14  ;;  %v1935_v62 = vsel %vm274_vm2, %v2978_v14, %v2979_v0 }
 0x3aa   : > { %v2989_v63 = vunpack.i.h.bf16 %v2987_v10  ;;  %v2988_v7 = vunpack.i.l.bf16 %v2987_v10  ;;  %v2998_v59 = vunpack.i.l.bf16 %v2997_v41  ;;  %v2999_v5 = vunpack.i.h.bf16 %v2997_v41 }
 0x3ab   : > { %2563 = vmatprep.subr.bf16.mxu1 %v2562_v39  ;;  %v2584_v36 = vpack.c.bf16 %v1960_v35, %v1935_v62 }
 0x3ac   : > { %v1680_v46 = vsel %vm222_vm0, %v2924_v60, %v2989_v63  ;;  %v1886_v45 = vsel %vm222_vm0, %v2969_v42, %v2988_v7  ;;  %v2580_v60 = vpack.c.bf16 %v1910_v38, %v1885_v23  ;;  %v1936_v20 = vsel %vm274_vm2, %v2979_v0, %v2998_v59 }
 0x3ad   : > { %v3002_v28 = vpop.permute.xlu1 %3001  ;;  %v2992_v29 = vpop.permute.xlu0 %2991  ;;  %v1730_v15 = vsel %vm274_vm2, %v2934_v40, %v2999_v5  ;;  %v2959_v40 = vunpack.i.h.bf16 %v3796_v44  ;;  %v2964_v7 = vunpack.i.h.bf16 %v3794_v21 }
 0x3ae   : > { %v3004_v16 = vunpack.i.h.bf16 %v3002_v28  ;;  %v3003_v50 = vunpack.i.l.bf16 %v3002_v28  ;;  %v2994_v31 = vunpack.i.h.bf16 %v2992_v29  ;;  %v2993_v13 = vunpack.i.l.bf16 %v2992_v29 }
 0x3b0   : > { %v1705_v47 = vsel %vm248_vm1, %v2929_v34, %v2994_v31  ;;  %v1911_v52 = vsel %vm248_vm1, %v2974_v9, %v2993_v13  ;;  %v1961_v6 = vsel %vm300_vm3, %v2984_v17, %v3003_v50  ;;  %v1755_v49 = vsel %vm300_vm3, %v2939_v56, %v3004_v16 }
 0x3b1   : > { %v2564_v3 = vpack.c.bf16 %v1705_v47, %v1680_v46  ;;  %v3012_v43 = vpop.permute.xlu0 %3011  ;;  %v2578_v37 = vpack.c.bf16 %v1911_v52, %v1886_v45  ;;  %v3007_v19 = vpop.permute.xlu1 %3006  ;;  %v2566_v34 = vpack.c.bf16 %v1959_v8, %v1934_v26  ;;  %v2582_v18 = vpack.c.bf16 %v1961_v6, %v1936_v20 }
 0x3b2   : > { %v2568_v51 = vpack.c.bf16 %v1755_v49, %v1730_v15  ;;  %v2919_v56 = vunpack.i.h.bf16 %v3736_v55  ;;  %v3014_v39 = vunpack.i.h.bf16 %v3012_v43  ;;  %v3013_v9 = vunpack.i.l.bf16 %v3012_v43 }
 0x3b3   : > { %2565 = vmatpush1.bf16.msra.mxu1 %v2564_v3  ;;  %2579 = vmatprep.subr.bf16.mxu0 %v2578_v37  ;;  %v3009_v55 = vunpack.i.h.bf16 %v3007_v19  ;;  %v3008_v28 = vunpack.i.l.bf16 %v3007_v19 }
 0x3b4   : > { %2567 = vmatprep.subr.bf16.mxu1 %v2566_v34  ;;  %2581 = vmatpush1.bf16.msra.mxu0 %v2580_v60  ;;  %v1786_v53 = vsel %vm332_vm4, %v2944_v22, %v2919_v56  ;;  %v2040_v16 = vsel %vm384_vm6, %v3013_v9, %v3014_v39 }
 0x3b5   : > { %v1833_v57 = vpop.permute.xlu0 %1832  ;;  %2583 = vmatprep.subr.bf16.mxu0 %v2582_v18  ;;  %v3027_v41 = vpop.permute.xlu1 %3026  ;;  %v2572_v33 = vpack.c.bf16 %v1786_v53, %v3671_v4  ;;  %v1811_v13 = vsel %vm358_vm5, %v2949_v30, %v3009_v55 }
 0x3b6   : > { %v3029_v24 = vunpack.i.h.bf16 %v3027_v41  ;;  %v3028_v42 = vunpack.i.l.bf16 %v3027_v41  ;;  %v1836_v50 = vsel %vm384_vm6, %v2954_v11, %v1833_v57 }
 0x3b7   : > { %2569 = vmatpush1.bf16.msra.mxu1 %v2568_v51  ;;  %v2576_v8 = vpack.c.bf16 %v1836_v50, %v1811_v13 }
 0x3b8   : > { %2585 = vmatpush1.bf16.msra.mxu0 %v2584_v36  ;;  %v2041_v21 = vsel %vm384_vm6, %v3014_v39, %v3028_v42 }
 0x3b9   : > { %v3017_v10 = vpop.permute.xlu0 %3016  ;;  %v2058_v38 = vpop.permute.xlu1 %2057 }
 0x3ba   : > { %v3019_v61 = vunpack.i.h.bf16 %v3017_v10  ;;  %v3018_v63 = vunpack.i.l.bf16 %v3017_v10 }
 0x3bc   : > { %v1991_v48 = vsel %vm332_vm4, %v3018_v63, %v3019_v61  ;;  %v1990_v22 = vsel %vm332_vm4, %v2959_v40, %v3018_v63  ;;  %v1992_v0 = vsel %vm332_vm4, %v3019_v61, %v2918_v58 }
 0x3bd   : > { %v2588_v44 = vpack.c.bf16 %v1991_v48, %v3688_v27  ;;  %v3022_v14 = vpop.permute.xlu0 %3021  ;;  %v2570_v17 = vpack.c.bf16 %v1990_v22, %v3678_v32  ;;  %v2586_v59 = vpack.c.bf16 %v1992_v0, %v3695_v12  ;;  %v2042_v27 = vsel %vm384_vm6, %v3028_v42, %v3029_v24  ;;  %v2062_v2 = vpop.permute.xlu1 %2061 }
 0x3be   : > { %v3024_v4 = vunpack.i.h.bf16 %v3022_v14  ;;  %v3023_v29 = vunpack.i.l.bf16 %v3022_v14 }
 0x3bf   : > { %2571 = vmatprep.subr.bf16.mxu1 %v2570_v17  ;;  %2587 = vmatprep.subr.bf16.mxu0 %v2586_v59 }
 0x3c0   : > { %v2016_v31 = vsel %vm358_vm5, %v3023_v29, %v3024_v4  ;;  %2573 = vmatpush1.bf16.msra.mxu1 %v2572_v33  ;;  %2589 = vmatpush1.bf16.msra.mxu0 %v2588_v44  ;;  %v2015_v32 = vsel %vm358_vm5, %v2964_v7, %v3023_v29  ;;  %v2017_v12 = vsel %vm358_vm5, %v3024_v4, %v3008_v28 }
 0x3c1   : > { %v2592_v54 = vpack.c.bf16 %v2041_v21, %v2016_v31  ;;  %v2060_v5 = vpop.permute.xlu0 %2059  ;;  %v2574_v11 = vpack.c.bf16 %v2040_v16, %v2015_v32  ;;  %v2590_v46 = vpack.c.bf16 %v2042_v27, %v2017_v12 }
 0x3c2   : > { %v2065_v47 = vsel %vm410_vm7, %v2058_v38, %v2060_v5  ;;  %v2066_v3 = vsel %vm410_vm7, %v2060_v5, %v2062_v2 }
 0x3c3   : > { %2575 = vmatprep.subr.bf16.mxu1 %v2574_v11  ;;  %2591 = vmatprep.subr.bf16.mxu0 %v2590_v46 }
 0x3c4   : > { %2577 = vmatpush1.bf16.msra.mxu1 %v2576_v8  ;;  %2593 = vmatpush1.bf16.msra.mxu0 %v2592_v54 }
 0x3c5   : > { %v3032_v45 = vpop.permute.xlu0 %3031  ;;  %2227 = vmatprep.subr.mxu1 %v2065_v47 }
 0x3c6   : > { %v3034_v52 = vunpack.i.h.bf16 %v3032_v45  ;;  %v3033_v6 = vunpack.i.l.bf16 %v3032_v45 }
 0x3c8   : > { %v1861_v30 = vsel %vm410_vm7, %v3787_v25, %v3034_v52  ;;  %v2067_v23 = vsel %vm410_vm7, %v2062_v2, %v3033_v6 }
 0x3c9   : > { %2228 = vmatpush1.msra.mxu1 %v1861_v30  ;;  %2298 = vmatprep.subr.mxu0 %v2067_v23 }
 0x3ca   : > { %2443 = vmatmul.mubr.msk.f32.vlgmr.msra.gmra.mrb[6].mxu1 %vm687_vm8, %v3817_v1  ;;  %2299 = vmatpush1.msra.mxu0 %v2066_v3 }
 0x3cb   : > { %2444 = vmatmul.mubr.msk.f32.vlgmr.msra.gmra.mrb[8].mxu0 %vm687_vm8, %v3817_v1 }
 0x3ce   : > { %v2135_v43 = vpop.permute.xlu1 %2134 }
 0x479   : > { %v2206_v37 = vpop.f32.mrb[6].mxu0 }
 0x47a   : > { %v2207_v25 = vadd.f32 %v2206_v37, %v2135_v43  ;;  %v2208_v26 = vpop.f32.mrb[7].mxu0 }
 0x47b   : > { %v2209_v60 = vadd.f32 %v2208_v26, %v2135_v43 }
 0x47c   : > { %v2353_v49 = vmax.f32 %v2207_v25, 0.0 }
 0x47d   : > { %v2354_v19 = vmax.f32 %v2209_v60, 0.0 }
 0x47e   : > { %2359 = vst [vmem:[%s199_s24] sm:$0xff] %v2353_v49 }
 0x47f   : > { %2360 = vst [vmem:[%s199_s24 + $0x8] sm:$0xff] %v2354_v19 }
 0x49d   : > { %v2277_v34 = vpop.f32.mrb[6].mxu1 }
 0x49e   : > { %v2278_v20 = vadd.f32 %v2277_v34, %v2135_v43  ;;  %v2279_v1 = vpop.f32.mrb[7].mxu1  ;;  %v2348_v35 = vpop.f32.mrb[8].mxu0 }
 0x49f   : > { %v2280_v18 = vadd.f32 %v2279_v1, %v2135_v43  ;;  %v2349_v15 = vadd.f32 %v2348_v35, %v2135_v43  ;;  %v2350_v62 = vpop.f32.mrb[9].mxu0 }
 0x4a0   : > { %v2355_v51 = vmax.f32 %v2278_v20, 0.0  ;;  %v2351_v57 = vadd.f32 %v2350_v62, %v2135_v43 }
 0x4a1   : > { %v2356_v56 = vmax.f32 %v2280_v18, 0.0  ;;  %v2357_v36 = vmax.f32 %v2349_v15, 0.0 }
 0x4a2   : > { %2361 = vst [vmem:[%s199_s24 + $0x10] sm:$0xff] %v2355_v51  ;;  %v2358_v53 = vmax.f32 %v2351_v57, 0.0 }
 0x4a3   : > { %2445 = vst [vmem:[%s199_s24 + $0x18] sm:$0xff] %v2356_v56  ;;  %2446 = vst [vmem:[%s199_s24 + $0x20] sm:$0xff] %v2357_v36 }
 0x4a4   : > { %2447 = vst [vmem:[%s199_s24 + $0x28] sm:$0xff] %v2358_v53 }
 0x4a5 PF: > { %s14_s15 = sadd.s32 1, %s3042_s15  }
 0x4a6   : > { %p11_p5 = scmp.ge.s32.totalorder %s14_s15, 4  }
 0x4a8   :  { %13 = sbr.rel (!%p11_p5) target bundleno = 1 (0x1), region = 71 }

</bundles_post_ra>
